<compile_context>
chip_gen: v7x
topology: tpu7x:2x2x1
jax: 0.10.0
libtpu: 0.0.40
codegen_flags: <defaults>
</compile_context>

<pallas_src>
import functools
import math

import jax
import jax.numpy as jnp
from jax.experimental import pallas as pl
from jax.experimental.pallas import tpu as pltpu

EPS = 1e-5

WEIGHT_ORDER = ("wq", "bq", "wk", "bk", "wv", "bv",
                "wo", "bo", "w1", "b1", "w2", "b2")


def _layer_norm(x):
    mean = jnp.mean(x, axis=-1, keepdims=True)
    var = jnp.mean(jnp.square(x - mean), axis=-1, keepdims=True)
    return (x - mean) * jax.lax.rsqrt(var + EPS)


# ---------------------------------------------------------------------------
# Fused Pallas kernel: whole encoder stack.
# grid = (batch, layer); one grid step = one full EncoderBlock for one
# sequence.  Activations live in the (revisited) output block across layers.
# ---------------------------------------------------------------------------
def encoder_stack_kernel(e_ref,
                         wq_ref, bq_ref, wk_ref, bk_ref, wv_ref, bv_ref,
                         wo_ref, bo_ref, w1_ref, b1_ref, w2_ref, b2_ref,
                         o_ref, *, n_heads, d_k, d_v):
    del d_v  # head split already baked into weight shapes
    layer = pl.program_id(1)

    # Output block index only depends on the batch axis, so o_ref is the same
    # resident VMEM buffer for every layer of this sequence: use it directly
    # as the layer-to-layer activation carrier (no extra scratch, no copy).
    @pl.when(layer == 0)
    def _():
        o_ref[...] = e_ref[...].astype(o_ref.dtype)

    x = o_ref[...].astype(jnp.float32)               # (S, D), resident
    S, D = x.shape

    # Broadcast activations across the head (batch) axis once; all attention
    # math below is batched dot_generals with `h` as the single batch dim.
    xb = jnp.broadcast_to(x[None], (n_heads, S, D))  # (H, S, D)

    # Per-head projections: weights pre-split as (H, D, d_k)/(H, 1, d_k).
    q = jnp.einsum("hsd,hde->hse", xb, wq_ref[...],
                   preferred_element_type=jnp.float32) + bq_ref[...]
    k = jnp.einsum("hsd,hde->hse", xb, wk_ref[...],
                   preferred_element_type=jnp.float32) + bk_ref[...]
    v = jnp.einsum("hsd,hde->hse", xb, wv_ref[...],
                   preferred_element_type=jnp.float32) + bv_ref[...]

    # Scores: contraction over head dim, batch over heads — no transpose.
    s = jnp.einsum("hqe,hke->hqk", q, k,
                   preferred_element_type=jnp.float32) * (1.0 / math.sqrt(d_k))
    s = s - jnp.max(s, axis=-1, keepdims=True)
    p = jnp.exp(s)
    p = p * pl.reciprocal(jnp.sum(p, axis=-1, keepdims=True), approx=True)

    ctx = jnp.einsum("hqk,hke->hqe", p, v,
                     preferred_element_type=jnp.float32)        # (H, S, d_v)

    # Output projection without concat: per-head (d_v, D) slabs of W_O,
    # batched matmul then reduce over heads (major-axis adds).
    attn = jnp.einsum("hse,hed->hsd", ctx, wo_ref[...],
                      preferred_element_type=jnp.float32)
    attn = jnp.sum(attn, axis=0) + bo_ref[...]                  # (S, D)

    # Residual + LayerNorm.
    sub = _layer_norm(attn + x)

    # Feed-forward: relu(x W1 + b1) W2 + b2.
    hid = jnp.maximum(
        jnp.dot(sub, w1_ref[...], preferred_element_type=jnp.float32)
        + b1_ref[...], 0.0)
    ffn = jnp.dot(hid, w2_ref[...],
                  preferred_element_type=jnp.float32) + b2_ref[...]
    out = _layer_norm(ffn + sub)

    o_ref[...] = out.astype(o_ref.dtype)             # carry to next layer;
    # HBM writeback happens automatically when the batch block index changes.


def encoder_forward(tokens, lut, pe, stacked, *, n_heads, d_k, d_v):
    """tokens: (B, S) int32; lut: (V, D); pe: (max_len, D); stacked: dict of
    per-layer-stacked, head-split weights."""
    # Embedding gather + positional add kept in plain JAX (token-indexed
    # gather has no clean rectangular BlockSpec at this scale).
    emb = jnp.take(lut, tokens, axis=0)               # (B, S, D)
    emb = emb + pe[None, :tokens.shape[1], :]
    B, S, D = emb.shape
    L = stacked["wq"].shape[0]

    ordered = [stacked[name] for name in WEIGHT_ORDER]

    def weight_spec(w):
        n_trailing = w.ndim - 1
        return pl.BlockSpec(
            (None,) + tuple(w.shape[1:]),
            lambda b, l, _n=n_trailing: (l,) + (0,) * _n)

    in_specs = [pl.BlockSpec((None, S, D), lambda b, l: (b, 0, 0))]
    in_specs += [weight_spec(w) for w in ordered]

    kernel = functools.partial(encoder_stack_kernel,
                               n_heads=n_heads, d_k=d_k, d_v=d_v)

    return pl.pallas_call(
        kernel,
        out_shape=jax.ShapeDtypeStruct((B, S, D), jnp.float32),
        grid_spec=pltpu.PrefetchScalarGridSpec(
            num_scalar_prefetch=0,
            grid=(B, L),                               # batch outer, layer inner
            in_specs=in_specs,
            out_specs=pl.BlockSpec((None, S, D), lambda b, l: (b, 0, 0)),
        ),
        compiler_params=pltpu.CompilerParams(
            dimension_semantics=("parallel", "arbitrary"),
            vmem_limit_bytes=64 * 1024 * 1024,
        ),
    )(emb, *ordered)


# ---------------------------------------------------------------------------
# Glue (plain JAX): positional encoding, parameter init, layer stacking.
# ---------------------------------------------------------------------------
def sinusoidal_positional_encoding(max_len, d_model):
    pos = jnp.arange(max_len, dtype=jnp.float32)[:, None]
    i = jnp.arange(0, d_model, 2, dtype=jnp.float32)
    div = jnp.exp(-i * (math.log(10000.0) / d_model))
    pe = jnp.zeros((max_len, d_model), jnp.float32)
    pe = pe.at[:, 0::2].set(jnp.sin(pos * div))
    pe = pe.at[:, 1::2].set(jnp.cos(pos * div))
    return pe


def init_block_params(key, d_model, d_k, d_v, n_heads, d_ff):
    ks = jax.random.split(key, 12)
    s = 0.05
    return {
        # projection weights stored as (in, out); biases as (1, out)
        "wq": s * jax.random.normal(ks[0], (d_model, n_heads * d_k), jnp.float32),
        "bq": s * jax.random.normal(ks[1], (1, n_heads * d_k), jnp.float32),
        "wk": s * jax.random.normal(ks[2], (d_model, n_heads * d_k), jnp.float32),
        "bk": s * jax.random.normal(ks[3], (1, n_heads * d_k), jnp.float32),
        "wv": s * jax.random.normal(ks[4], (d_model, n_heads * d_v), jnp.float32),
        "bv": s * jax.random.normal(ks[5], (1, n_heads * d_v), jnp.float32),
        "wo": s * jax.random.normal(ks[6], (n_heads * d_v, d_model), jnp.float32),
        "bo": s * jax.random.normal(ks[7], (1, d_model), jnp.float32),
        "w1": s * jax.random.normal(ks[8], (d_model, d_ff), jnp.float32),
        "b1": s * jax.random.normal(ks[9], (1, d_ff), jnp.float32),
        "w2": s * jax.random.normal(ks[10], (d_ff, d_model), jnp.float32),
        "b2": s * jax.random.normal(ks[11], (1, d_model), jnp.float32),
    }


def stack_block_params(block_params, *, n_heads, d_k, d_v):
    """Stack per-block params along a leading layer axis and pre-split heads
    on the host so the kernel never reshapes the lane dimension."""
    D = block_params[0]["wq"].shape[0]

    def split_in(w, dh):    # (D, H*dh) -> (H, D, dh)
        return w.reshape(D, n_heads, dh).transpose(1, 0, 2)

    def split_bias(b, dh):  # (1, H*dh) -> (H, 1, dh)
        return b.reshape(n_heads, dh)[:, None, :]

    def split_out(w, dh):   # (H*dh, D) -> (H, dh, D)
        return w.reshape(n_heads, dh, w.shape[1])

    transforms = {
        "wq": lambda w: split_in(w, d_k),  "bq": lambda b: split_bias(b, d_k),
        "wk": lambda w: split_in(w, d_k),  "bk": lambda b: split_bias(b, d_k),
        "wv": lambda w: split_in(w, d_v),  "bv": lambda b: split_bias(b, d_v),
        "wo": lambda w: split_out(w, d_v), "bo": lambda b: b,
        "w1": lambda w: w, "b1": lambda b: b,
        "w2": lambda w: w, "b2": lambda b: b,
    }
    return {name: jnp.stack([transforms[name](bp[name]) for bp in block_params],
                            axis=0)
            for name in WEIGHT_ORDER}


# ---------------------------------------------------------------------------
# Pure-JAX reference (mirrors the PyTorch forward, eval mode) for verification.
# ---------------------------------------------------------------------------
def encoder_block_ref(x, p, *, n_heads, d_k, d_v):
    q = x @ p["wq"] + p["bq"]
    k = x @ p["wk"] + p["bk"]
    v = x @ p["wv"] + p["bv"]
    heads = []
    for h in range(n_heads):
        qh = q[..., h * d_k:(h + 1) * d_k]
        kh = k[..., h * d_k:(h + 1) * d_k]
        vh = v[..., h * d_v:(h + 1) * d_v]
        s = jnp.einsum("bqd,bkd->bqk", qh, kh) / math.sqrt(d_k)
        p_attn = jax.nn.softmax(s, axis=-1)
        heads.append(jnp.einsum("bqk,bkd->bqd", p_attn, vh))
    attn = jnp.concatenate(heads, axis=-1) @ p["wo"] + p["bo"]
    sub = _layer_norm(attn + x)
    ffn = jnp.maximum(sub @ p["w1"] + p["b1"], 0.0) @ p["w2"] + p["b2"]
    return _layer_norm(ffn + sub)


def encoder_ref(tokens, lut, pe, block_params, *, n_heads, d_k, d_v):
    emb = jnp.take(lut, tokens, axis=0) + pe[None, :tokens.shape[1], :]
    for bp in block_params:
        emb = encoder_block_ref(emb, bp, n_heads=n_heads, d_k=d_k, d_v=d_v)
    return emb


if __name__ == "__main__":
    # small shapes consistent with the module's forward
    vocab_size = 50
    d_model = 32
    dim_feedfwd = 64
    d_k = d_v = 8
    n_heads = 4
    n_encoder_blocks = 2
    batch, seq = 2, 8

    root = jax.random.PRNGKey(0)
    k_lut, k_tok, *k_blocks = jax.random.split(root, 2 + n_encoder_blocks)

    lut = 0.1 * jax.random.normal(k_lut, (vocab_size, d_model), jnp.float32)
    pe = sinusoidal_positional_encoding(64, d_model)
    block_params = [
        init_block_params(k, d_model, d_k, d_v, n_heads, dim_feedfwd)
        for k in k_blocks
    ]
    stacked = stack_block_params(block_params,
                                 n_heads=n_heads, d_k=d_k, d_v=d_v)
    tokens = jax.random.randint(k_tok, (batch, seq), 0, vocab_size, jnp.int32)

    out = encoder_forward(tokens, lut, pe, stacked,
                          n_heads=n_heads, d_k=d_k, d_v=d_v)
    out = jax.block_until_ready(out)

    ref = encoder_ref(tokens, lut, pe, block_params,
                      n_heads=n_heads, d_k=d_k, d_v=d_v)
    assert out.shape == (batch, seq, d_model)
    # Tolerance loosened vs exact f32 reference because the softmax
    # denominator uses the EUP approximate reciprocal.
    err = jnp.max(jnp.abs(out - ref))
    assert jnp.allclose(out, ref, rtol=1e-2, atol=1e-2), f"mismatch, max err {err}"

    print("KERNEL_OK")
</pallas_src>

<mosaic_0001>
module attributes {stable_mosaic.version = 11 : i64} {
  func.func @encoder_stack_kernel(%arg0: i32, %arg1: i32, %arg2: memref<1x8x32xf32, #tpu.memory_space<vmem>>, %arg3: memref<1x4x32x8xf32, #tpu.memory_space<vmem>>, %arg4: memref<1x4x1x8xf32, #tpu.memory_space<vmem>>, %arg5: memref<1x4x32x8xf32, #tpu.memory_space<vmem>>, %arg6: memref<1x4x1x8xf32, #tpu.memory_space<vmem>>, %arg7: memref<1x4x32x8xf32, #tpu.memory_space<vmem>>, %arg8: memref<1x4x1x8xf32, #tpu.memory_space<vmem>>, %arg9: memref<1x4x8x32xf32, #tpu.memory_space<vmem>>, %arg10: memref<1x1x32xf32, #tpu.memory_space<vmem>>, %arg11: memref<1x32x64xf32, #tpu.memory_space<vmem>>, %arg12: memref<1x1x64xf32, #tpu.memory_space<vmem>>, %arg13: memref<1x64x32xf32, #tpu.memory_space<vmem>>, %arg14: memref<1x1x32xf32, #tpu.memory_space<vmem>>, %arg15: memref<1x8x32xf32, #tpu.memory_space<vmem>>) attributes {dimension_semantics = [#tpu.dimension_semantics<parallel>, #tpu.dimension_semantics<arbitrary>], iteration_bounds = array<i64: 2, 2>, scalar_prefetch = 0 : i64, scratch_operands = 0 : i64, tpu.core_type = #tpu.core_type<tc>, window_params = [{transform_indices = @transform_0, window_bounds = array<i64: 1, 8, 32>}, {transform_indices = @transform_1, window_bounds = array<i64: 1, 4, 32, 8>}, {transform_indices = @transform_2, window_bounds = array<i64: 1, 4, 1, 8>}, {transform_indices = @transform_3, window_bounds = array<i64: 1, 4, 32, 8>}, {transform_indices = @transform_4, window_bounds = array<i64: 1, 4, 1, 8>}, {transform_indices = @transform_5, window_bounds = array<i64: 1, 4, 32, 8>}, {transform_indices = @transform_6, window_bounds = array<i64: 1, 4, 1, 8>}, {transform_indices = @transform_7, window_bounds = array<i64: 1, 4, 8, 32>}, {transform_indices = @transform_8, window_bounds = array<i64: 1, 1, 32>}, {transform_indices = @transform_9, window_bounds = array<i64: 1, 32, 64>}, {transform_indices = @transform_10, window_bounds = array<i64: 1, 1, 64>}, {transform_indices = @transform_11, window_bounds = array<i64: 1, 64, 32>}, {transform_indices = @transform_12, window_bounds = array<i64: 1, 1, 32>}, {transform_indices = @transform_13, window_bounds = array<i64: 1, 8, 32>}]} {
    %c0_i32 = arith.constant 0 : i32
    %0 = arith.cmpi eq, %arg1, %c0_i32 : i32
    %1 = arith.extui %0 : i1 to i32
    %c0_i32_0 = arith.constant 0 : i32
    %2 = arith.cmpi ne, %1, %c0_i32_0 : i32
    scf.if %2 {
      %c0_71 = arith.constant 0 : index
      %c0_72 = arith.constant 0 : index
      %c0_73 = arith.constant 0 : index
      %108 = vector.load %arg2[%c0_71, %c0_72, %c0_73] : memref<1x8x32xf32, #tpu.memory_space<vmem>>, vector<1x8x32xf32>
      %109 = vector.shape_cast %108 : vector<1x8x32xf32> to vector<8x32xf32>
      %c0_74 = arith.constant 0 : index
      %c0_75 = arith.constant 0 : index
      %c0_76 = arith.constant 0 : index
      %110 = vector.load %arg15[%c0_74, %c0_75, %c0_76] : memref<1x8x32xf32, #tpu.memory_space<vmem>>, vector<1x8x32xf32>
      %111 = vector.shape_cast %110 : vector<1x8x32xf32> to vector<8x32xf32>
      %112 = vector.shape_cast %109 : vector<8x32xf32> to vector<1x8x32xf32>
      tpu.vector_store %arg15[%c0_74, %c0_75, %c0_76], %112 {strides = array<i32>} : memref<1x8x32xf32, #tpu.memory_space<vmem>>, vector<1x8x32xf32>,
    } else {
    }
    %c0 = arith.constant 0 : index
    %c0_1 = arith.constant 0 : index
    %c0_2 = arith.constant 0 : index
    %3 = vector.load %arg15[%c0, %c0_1, %c0_2] : memref<1x8x32xf32, #tpu.memory_space<vmem>>, vector<1x8x32xf32>
    %4 = vector.shape_cast %3 : vector<1x8x32xf32> to vector<8x32xf32>
    %5 = vector.shape_cast %4 : vector<8x32xf32> to vector<1x8x32xf32>
    %6 = vector.shape_cast %5 : vector<1x8x32xf32> to vector<1x8x32xf32>
    %7 = vector.broadcast %6 : vector<1x8x32xf32> to vector<4x8x32xf32>
    %c0_3 = arith.constant 0 : index
    %c0_4 = arith.constant 0 : index
    %c0_5 = arith.constant 0 : index
    %c0_6 = arith.constant 0 : index
    %8 = vector.load %arg3[%c0_3, %c0_4, %c0_5, %c0_6] : memref<1x4x32x8xf32, #tpu.memory_space<vmem>>, vector<1x4x32x8xf32>
    %9 = vector.shape_cast %8 : vector<1x4x32x8xf32> to vector<4x32x8xf32>
    "tpu.trace_start"() <{level = 10 : i32, message = "hsd,hde->hse"}> : () -> ()
    %cst = arith.constant dense<0.000000e+00> : vector<4x8x8xf32>
    %10 = tpu.matmul %7, %9, %cst {dimension_numbers = #tpu.dot_dimension_numbers<[2], [1], [1], [2], [0, 0, 0, 1, 1, 2], [0], [0]>} : vector<4x8x32xf32>, vector<4x32x8xf32>, vector<4x8x8xf32> -> vector<4x8x8xf32>
    "tpu.trace_stop"() : () -> ()
    %c0_7 = arith.constant 0 : index
    %c0_8 = arith.constant 0 : index
    %c0_9 = arith.constant 0 : index
    %c0_10 = arith.constant 0 : index
    %11 = vector.load %arg4[%c0_7, %c0_8, %c0_9, %c0_10] : memref<1x4x1x8xf32, #tpu.memory_space<vmem>>, vector<1x4x1x8xf32>
    %12 = vector.shape_cast %11 : vector<1x4x1x8xf32> to vector<4x1x8xf32>
    %13 = vector.broadcast %12 : vector<4x1x8xf32> to vector<4x8x8xf32>
    %14 = arith.addf %10, %13 : vector<4x8x8xf32>
    %c0_11 = arith.constant 0 : index
    %c0_12 = arith.constant 0 : index
    %c0_13 = arith.constant 0 : index
    %c0_14 = arith.constant 0 : index
    %15 = vector.load %arg5[%c0_11, %c0_12, %c0_13, %c0_14] : memref<1x4x32x8xf32, #tpu.memory_space<vmem>>, vector<1x4x32x8xf32>
    %16 = vector.shape_cast %15 : vector<1x4x32x8xf32> to vector<4x32x8xf32>
    "tpu.trace_start"() <{level = 10 : i32, message = "hsd,hde->hse"}> : () -> ()
    %cst_15 = arith.constant dense<0.000000e+00> : vector<4x8x8xf32>
    %17 = tpu.matmul %7, %16, %cst_15 {dimension_numbers = #tpu.dot_dimension_numbers<[2], [1], [1], [2], [0, 0, 0, 1, 1, 2], [0], [0]>} : vector<4x8x32xf32>, vector<4x32x8xf32>, vector<4x8x8xf32> -> vector<4x8x8xf32>
    "tpu.trace_stop"() : () -> ()
    %c0_16 = arith.constant 0 : index
    %c0_17 = arith.constant 0 : index
    %c0_18 = arith.constant 0 : index
    %c0_19 = arith.constant 0 : index
    %18 = vector.load %arg6[%c0_16, %c0_17, %c0_18, %c0_19] : memref<1x4x1x8xf32, #tpu.memory_space<vmem>>, vector<1x4x1x8xf32>
    %19 = vector.shape_cast %18 : vector<1x4x1x8xf32> to vector<4x1x8xf32>
    %20 = vector.broadcast %19 : vector<4x1x8xf32> to vector<4x8x8xf32>
    %21 = arith.addf %17, %20 : vector<4x8x8xf32>
    %c0_20 = arith.constant 0 : index
    %c0_21 = arith.constant 0 : index
    %c0_22 = arith.constant 0 : index
    %c0_23 = arith.constant 0 : index
    %22 = vector.load %arg7[%c0_20, %c0_21, %c0_22, %c0_23] : memref<1x4x32x8xf32, #tpu.memory_space<vmem>>, vector<1x4x32x8xf32>
    %23 = vector.shape_cast %22 : vector<1x4x32x8xf32> to vector<4x32x8xf32>
    "tpu.trace_start"() <{level = 10 : i32, message = "hsd,hde->hse"}> : () -> ()
    %cst_24 = arith.constant dense<0.000000e+00> : vector<4x8x8xf32>
    %24 = tpu.matmul %7, %23, %cst_24 {dimension_numbers = #tpu.dot_dimension_numbers<[2], [1], [1], [2], [0, 0, 0, 1, 1, 2], [0], [0]>} : vector<4x8x32xf32>, vector<4x32x8xf32>, vector<4x8x8xf32> -> vector<4x8x8xf32>
    "tpu.trace_stop"() : () -> ()
    %c0_25 = arith.constant 0 : index
    %c0_26 = arith.constant 0 : index
    %c0_27 = arith.constant 0 : index
    %c0_28 = arith.constant 0 : index
    %25 = vector.load %arg8[%c0_25, %c0_26, %c0_27, %c0_28] : memref<1x4x1x8xf32, #tpu.memory_space<vmem>>, vector<1x4x1x8xf32>
    %26 = vector.shape_cast %25 : vector<1x4x1x8xf32> to vector<4x1x8xf32>
    %27 = vector.broadcast %26 : vector<4x1x8xf32> to vector<4x8x8xf32>
    %28 = arith.addf %24, %27 : vector<4x8x8xf32>
    "tpu.trace_start"() <{level = 10 : i32, message = "hqe,hke->hqk"}> : () -> ()
    %cst_29 = arith.constant dense<0.000000e+00> : vector<4x8x8xf32>
    %29 = tpu.matmul %14, %21, %cst_29 {dimension_numbers = #tpu.dot_dimension_numbers<[2], [2], [1], [1], [0, 0, 0, 1, 1, 1], [0], [0]>} : vector<4x8x8xf32>, vector<4x8x8xf32>, vector<4x8x8xf32> -> vector<4x8x8xf32>
    "tpu.trace_stop"() : () -> ()
    %cst_30 = arith.constant 0.353553385 : f32
    %30 = vector.broadcast %cst_30 : f32 to vector<4x8x8xf32>
    %31 = arith.mulf %29, %30 : vector<4x8x8xf32>
    %cst_31 = arith.constant dense<0xFF800000> : vector<4x8xf32>
    %32 = vector.multi_reduction <maximumf>, %31, %cst_31 [2] : vector<4x8x8xf32> to vector<4x8xf32>
    %33 = vector.shape_cast %32 : vector<4x8xf32> to vector<4x8x1xf32>
    %34 = vector.broadcast %33 : vector<4x8x1xf32> to vector<4x8x8xf32>
    %35 = arith.subf %31, %34 : vector<4x8x8xf32>
    %36 = math.exp %35 : vector<4x8x8xf32>
    %cst_32 = arith.constant dense<0.000000e+00> : vector<4x8xf32>
    %37 = vector.multi_reduction <add>, %36, %cst_32 [2] : vector<4x8x8xf32> to vector<4x8xf32>
    %38 = vector.shape_cast %37 : vector<4x8xf32> to vector<4x8x1xf32>
    %39 = tpu.reciprocal %38 {approx = true} : vector<4x8x1xf32> -> vector<4x8x1xf32>
    %40 = vector.broadcast %39 : vector<4x8x1xf32> to vector<4x8x8xf32>
    %41 = arith.mulf %36, %40 : vector<4x8x8xf32>
    "tpu.trace_start"() <{level = 10 : i32, message = "hqk,hke->hqe"}> : () -> ()
    %cst_33 = arith.constant dense<0.000000e+00> : vector<4x8x8xf32>
    %42 = tpu.matmul %41, %28, %cst_33 {dimension_numbers = #tpu.dot_dimension_numbers<[2], [1], [1], [2], [0, 0, 0, 1, 1, 2], [0], [0]>} : vector<4x8x8xf32>, vector<4x8x8xf32>, vector<4x8x8xf32> -> vector<4x8x8xf32>
    "tpu.trace_stop"() : () -> ()
    %c0_34 = arith.constant 0 : index
    %c0_35 = arith.constant 0 : index
    %c0_36 = arith.constant 0 : index
    %c0_37 = arith.constant 0 : index
    %43 = vector.load %arg9[%c0_34, %c0_35, %c0_36, %c0_37] : memref<1x4x8x32xf32, #tpu.memory_space<vmem>>, vector<1x4x8x32xf32>
    %44 = vector.shape_cast %43 : vector<1x4x8x32xf32> to vector<4x8x32xf32>
    "tpu.trace_start"() <{level = 10 : i32, message = "hse,hed->hsd"}> : () -> ()
    %cst_38 = arith.constant dense<0.000000e+00> : vector<4x8x32xf32>
    %45 = tpu.matmul %42, %44, %cst_38 {dimension_numbers = #tpu.dot_dimension_numbers<[2], [1], [1], [2], [0, 0, 0, 1, 1, 2], [0], [0]>} : vector<4x8x8xf32>, vector<4x8x32xf32>, vector<4x8x32xf32> -> vector<4x8x32xf32>
    "tpu.trace_stop"() : () -> ()
    %cst_39 = arith.constant dense<0.000000e+00> : vector<8x32xf32>
    %46 = vector.multi_reduction <add>, %45, %cst_39 [0] : vector<4x8x32xf32> to vector<8x32xf32>
    %c0_40 = arith.constant 0 : index
    %c0_41 = arith.constant 0 : index
    %c0_42 = arith.constant 0 : index
    %47 = vector.load %arg10[%c0_40, %c0_41, %c0_42] : memref<1x1x32xf32, #tpu.memory_space<vmem>>, vector<1x1x32xf32>
    %48 = vector.shape_cast %47 : vector<1x1x32xf32> to vector<1x32xf32>
    %49 = vector.broadcast %48 : vector<1x32xf32> to vector<8x32xf32>
    %50 = arith.addf %46, %49 : vector<8x32xf32>
    %51 = arith.addf %50, %4 : vector<8x32xf32>
    %cst_43 = arith.constant dense<0.000000e+00> : vector<8xf32>
    %52 = vector.multi_reduction <add>, %51, %cst_43 [1] : vector<8x32xf32> to vector<8xf32>
    %53 = vector.shape_cast %52 : vector<8xf32> to vector<8x1xf32>
    %cst_44 = arith.constant 3.200000e+01 : f32
    %54 = vector.broadcast %cst_44 : f32 to vector<8x1xf32>
    %55 = arith.divf %53, %54 : vector<8x1xf32>
    %56 = vector.broadcast %55 : vector<8x1xf32> to vector<8x32xf32>
    %57 = arith.subf %51, %56 : vector<8x32xf32>
    %58 = arith.mulf %57, %57 : vector<8x32xf32>
    %cst_45 = arith.constant dense<0.000000e+00> : vector<8xf32>
    %59 = vector.multi_reduction <add>, %58, %cst_45 [1] : vector<8x32xf32> to vector<8xf32>
    %60 = vector.shape_cast %59 : vector<8xf32> to vector<8x1xf32>
    %cst_46 = arith.constant 3.200000e+01 : f32
    %61 = vector.broadcast %cst_46 : f32 to vector<8x1xf32>
    %62 = arith.divf %60, %61 : vector<8x1xf32>
    %63 = vector.broadcast %55 : vector<8x1xf32> to vector<8x32xf32>
    %64 = arith.subf %51, %63 : vector<8x32xf32>
    %cst_47 = arith.constant 9.99999974E-6 : f32
    %65 = vector.broadcast %cst_47 : f32 to vector<8x1xf32>
    %66 = arith.addf %62, %65 : vector<8x1xf32>
    %67 = math.rsqrt %66 : vector<8x1xf32>
    %68 = vector.broadcast %67 : vector<8x1xf32> to vector<8x32xf32>
    %69 = arith.mulf %64, %68 : vector<8x32xf32>
    %c0_48 = arith.constant 0 : index
    %c0_49 = arith.constant 0 : index
    %c0_50 = arith.constant 0 : index
    %70 = vector.load %arg11[%c0_48, %c0_49, %c0_50] : memref<1x32x64xf32, #tpu.memory_space<vmem>>, vector<1x32x64xf32>
    %71 = vector.shape_cast %70 : vector<1x32x64xf32> to vector<32x64xf32>
    %cst_51 = arith.constant dense<0.000000e+00> : vector<8x64xf32>
    %72 = tpu.matmul %69, %71, %cst_51 {dimension_numbers = #tpu.dot_dimension_numbers<[1], [0], [0], [1], [0, 0, 1, 1], [], []>} : vector<8x32xf32>, vector<32x64xf32>, vector<8x64xf32> -> vector<8x64xf32>
    %c0_52 = arith.constant 0 : index
    %c0_53 = arith.constant 0 : index
    %c0_54 = arith.constant 0 : index
    %73 = vector.load %arg12[%c0_52, %c0_53, %c0_54] : memref<1x1x64xf32, #tpu.memory_space<vmem>>, vector<1x1x64xf32>
    %74 = vector.shape_cast %73 : vector<1x1x64xf32> to vector<1x64xf32>
    %75 = vector.broadcast %74 : vector<1x64xf32> to vector<8x64xf32>
    %76 = arith.addf %72, %75 : vector<8x64xf32>
    %cst_55 = arith.constant 0.000000e+00 : f32
    %77 = vector.broadcast %cst_55 : f32 to vector<8x64xf32>
    %78 = arith.maximumf %76, %77 : vector<8x64xf32>
    %c0_56 = arith.constant 0 : index
    %c0_57 = arith.constant 0 : index
    %c0_58 = arith.constant 0 : index
    %79 = vector.load %arg13[%c0_56, %c0_57, %c0_58] : memref<1x64x32xf32, #tpu.memory_space<vmem>>, vector<1x64x32xf32>
    %80 = vector.shape_cast %79 : vector<1x64x32xf32> to vector<64x32xf32>
    %cst_59 = arith.constant dense<0.000000e+00> : vector<8x32xf32>
    %81 = tpu.matmul %78, %80, %cst_59 {dimension_numbers = #tpu.dot_dimension_numbers<[1], [0], [0], [1], [0, 0, 1, 1], [], []>} : vector<8x64xf32>, vector<64x32xf32>, vector<8x32xf32> -> vector<8x32xf32>
    %c0_60 = arith.constant 0 : index
    %c0_61 = arith.constant 0 : index
    %c0_62 = arith.constant 0 : index
    %82 = vector.load %arg14[%c0_60, %c0_61, %c0_62] : memref<1x1x32xf32, #tpu.memory_space<vmem>>, vector<1x1x32xf32>
    %83 = vector.shape_cast %82 : vector<1x1x32xf32> to vector<1x32xf32>
    %84 = vector.broadcast %83 : vector<1x32xf32> to vector<8x32xf32>
    %85 = arith.addf %81, %84 : vector<8x32xf32>
    %86 = arith.addf %85, %69 : vector<8x32xf32>
    %cst_63 = arith.constant dense<0.000000e+00> : vector<8xf32>
    %87 = vector.multi_reduction <add>, %86, %cst_63 [1] : vector<8x32xf32> to vector<8xf32>
    %88 = vector.shape_cast %87 : vector<8xf32> to vector<8x1xf32>
    %cst_64 = arith.constant 3.200000e+01 : f32
    %89 = vector.broadcast %cst_64 : f32 to vector<8x1xf32>
    %90 = arith.divf %88, %89 : vector<8x1xf32>
    %91 = vector.broadcast %90 : vector<8x1xf32> to vector<8x32xf32>
    %92 = arith.subf %86, %91 : vector<8x32xf32>
    %93 = arith.mulf %92, %92 : vector<8x32xf32>
    %cst_65 = arith.constant dense<0.000000e+00> : vector<8xf32>
    %94 = vector.multi_reduction <add>, %93, %cst_65 [1] : vector<8x32xf32> to vector<8xf32>
    %95 = vector.shape_cast %94 : vector<8xf32> to vector<8x1xf32>
    %cst_66 = arith.constant 3.200000e+01 : f32
    %96 = vector.broadcast %cst_66 : f32 to vector<8x1xf32>
    %97 = arith.divf %95, %96 : vector<8x1xf32>
    %98 = vector.broadcast %90 : vector<8x1xf32> to vector<8x32xf32>
    %99 = arith.subf %86, %98 : vector<8x32xf32>
    %cst_67 = arith.constant 9.99999974E-6 : f32
    %100 = vector.broadcast %cst_67 : f32 to vector<8x1xf32>
    %101 = arith.addf %97, %100 : vector<8x1xf32>
    %102 = math.rsqrt %101 : vector<8x1xf32>
    %103 = vector.broadcast %102 : vector<8x1xf32> to vector<8x32xf32>
    %104 = arith.mulf %99, %103 : vector<8x32xf32>
    %c0_68 = arith.constant 0 : index
    %c0_69 = arith.constant 0 : index
    %c0_70 = arith.constant 0 : index
    %105 = vector.load %arg15[%c0_68, %c0_69, %c0_70] : memref<1x8x32xf32, #tpu.memory_space<vmem>>, vector<1x8x32xf32>
    %106 = vector.shape_cast %105 : vector<1x8x32xf32> to vector<8x32xf32>
    %107 = vector.shape_cast %104 : vector<8x32xf32> to vector<1x8x32xf32>
    tpu.vector_store %arg15[%c0_68, %c0_69, %c0_70], %107 {strides = array<i32>} : memref<1x8x32xf32, #tpu.memory_space<vmem>>, vector<1x8x32xf32>,
    return
  }
  func.func @transform_0(%arg0: i32, %arg1: i32) -> (i32, i32, i32) {
    %c0_i32 = arith.constant 0 : i32
    %c0_i32_0 = arith.constant 0 : i32
    %c0_i32_1 = arith.constant 0 : i32
    return %arg0, %c0_i32, %c0_i32_0 : i32, i32, i32
  }
  func.func @transform_1(%arg0: i32, %arg1: i32) -> (i32, i32, i32, i32) {
    %c0_i32 = arith.constant 0 : i32
    %c0_i32_0 = arith.constant 0 : i32
    %c0_i32_1 = arith.constant 0 : i32
    %c0_i32_2 = arith.constant 0 : i32
    return %arg1, %c0_i32, %c0_i32_0, %c0_i32_1 : i32, i32, i32, i32
  }
  func.func @transform_2(%arg0: i32, %arg1: i32) -> (i32, i32, i32, i32) {
    %c0_i32 = arith.constant 0 : i32
    %c0_i32_0 = arith.constant 0 : i32
    %c0_i32_1 = arith.constant 0 : i32
    %c0_i32_2 = arith.constant 0 : i32
    return %arg1, %c0_i32, %c0_i32_0, %c0_i32_1 : i32, i32, i32, i32
  }
  func.func @transform_3(%arg0: i32, %arg1: i32) -> (i32, i32, i32, i32) {
    %c0_i32 = arith.constant 0 : i32
    %c0_i32_0 = arith.constant 0 : i32
    %c0_i32_1 = arith.constant 0 : i32
    %c0_i32_2 = arith.constant 0 : i32
    return %arg1, %c0_i32, %c0_i32_0, %c0_i32_1 : i32, i32, i32, i32
  }
  func.func @transform_4(%arg0: i32, %arg1: i32) -> (i32, i32, i32, i32) {
    %c0_i32 = arith.constant 0 : i32
    %c0_i32_0 = arith.constant 0 : i32
    %c0_i32_1 = arith.constant 0 : i32
    %c0_i32_2 = arith.constant 0 : i32
    return %arg1, %c0_i32, %c0_i32_0, %c0_i32_1 : i32, i32, i32, i32
  }
  func.func @transform_5(%arg0: i32, %arg1: i32) -> (i32, i32, i32, i32) {
    %c0_i32 = arith.constant 0 : i32
    %c0_i32_0 = arith.constant 0 : i32
    %c0_i32_1 = arith.constant 0 : i32
    %c0_i32_2 = arith.constant 0 : i32
    return %arg1, %c0_i32, %c0_i32_0, %c0_i32_1 : i32, i32, i32, i32
  }
  func.func @transform_6(%arg0: i32, %arg1: i32) -> (i32, i32, i32, i32) {
    %c0_i32 = arith.constant 0 : i32
    %c0_i32_0 = arith.constant 0 : i32
    %c0_i32_1 = arith.constant 0 : i32
    %c0_i32_2 = arith.constant 0 : i32
    return %arg1, %c0_i32, %c0_i32_0, %c0_i32_1 : i32, i32, i32, i32
  }
  func.func @transform_7(%arg0: i32, %arg1: i32) -> (i32, i32, i32, i32) {
    %c0_i32 = arith.constant 0 : i32
    %c0_i32_0 = arith.constant 0 : i32
    %c0_i32_1 = arith.constant 0 : i32
    %c0_i32_2 = arith.constant 0 : i32
    return %arg1, %c0_i32, %c0_i32_0, %c0_i32_1 : i32, i32, i32, i32
  }
  func.func @transform_8(%arg0: i32, %arg1: i32) -> (i32, i32, i32) {
    %c0_i32 = arith.constant 0 : i32
    %c0_i32_0 = arith.constant 0 : i32
    %c0_i32_1 = arith.constant 0 : i32
    return %arg1, %c0_i32, %c0_i32_0 : i32, i32, i32
  }
  func.func @transform_9(%arg0: i32, %arg1: i32) -> (i32, i32, i32) {
    %c0_i32 = arith.constant 0 : i32
    %c0_i32_0 = arith.constant 0 : i32
    %c0_i32_1 = arith.constant 0 : i32
    return %arg1, %c0_i32, %c0_i32_0 : i32, i32, i32
  }
  func.func @transform_10(%arg0: i32, %arg1: i32) -> (i32, i32, i32) {
    %c0_i32 = arith.constant 0 : i32
    %c0_i32_0 = arith.constant 0 : i32
    %c0_i32_1 = arith.constant 0 : i32
    return %arg1, %c0_i32, %c0_i32_0 : i32, i32, i32
  }
  func.func @transform_11(%arg0: i32, %arg1: i32) -> (i32, i32, i32) {
    %c0_i32 = arith.constant 0 : i32
    %c0_i32_0 = arith.constant 0 : i32
    %c0_i32_1 = arith.constant 0 : i32
    return %arg1, %c0_i32, %c0_i32_0 : i32, i32, i32
  }
  func.func @transform_12(%arg0: i32, %arg1: i32) -> (i32, i32, i32) {
    %c0_i32 = arith.constant 0 : i32
    %c0_i32_0 = arith.constant 0 : i32
    %c0_i32_1 = arith.constant 0 : i32
    return %arg1, %c0_i32, %c0_i32_0 : i32, i32, i32
  }
  func.func @transform_13(%arg0: i32, %arg1: i32) -> (i32, i32, i32) {
    %c0_i32 = arith.constant 0 : i32
    %c0_i32_0 = arith.constant 0 : i32
    %c0_i32_1 = arith.constant 0 : i32
    return %arg0, %c0_i32, %c0_i32_0 : i32, i32, i32
  }
}

</mosaic_0001>

<bundles_post_ra>
// kernel: tpu_custom_call.1
= control target key start
LH: loop header
LB: loop body
LE: loop exit
PB: predicated region body
PF: predicated region fallthrough
CT: control target
= control target key end

     0   :  { %s5736_s0 = inlined_call_operand.hbm [shape: f32[2,8,32], index: 0, kind: input, shape index: {}]   ;;  %s5737_s1 = inlined_call_operand.hbm [shape: f32[2,4,32,8], index: 1, kind: input, shape index: {}]   ;;  %s5738_s2 = inlined_call_operand.hbm [shape: f32[2,4,1,8], index: 2, kind: input, shape index: {}]   ;;  %s5739_s3 = inlined_call_operand.hbm [shape: f32[2,4,32,8], index: 3, kind: input, shape index: {}]   ;;  %s5740_s4 = inlined_call_operand.hbm [shape: f32[2,4,1,8], index: 4, kind: input, shape index: {}]   ;;  %s5741_s5 = inlined_call_operand.hbm [shape: f32[2,4,32,8], index: 5, kind: input, shape index: {}]   ;;  %s5742_s6 = inlined_call_operand.hbm [shape: f32[2,4,1,8], index: 6, kind: input, shape index: {}]   ;;  %s5743_s7 = inlined_call_operand.hbm [shape: f32[2,4,8,32], index: 7, kind: input, shape index: {}]   ;;  %s5744_s8 = inlined_call_operand.hbm [shape: f32[2,1,32], index: 8, kind: input, shape index: {}]   ;;  %s5745_s9 = inlined_call_operand.hbm [shape: f32[2,32,64], index: 9, kind: input, shape index: {}]   ;;  %s5746_s10 = inlined_call_operand.hbm [shape: f32[2,1,64], index: 10, kind: input, shape index: {}]   ;;  %s5747_s11 = inlined_call_operand.hbm [shape: f32[2,64,32], index: 11, kind: input, shape index: {}]   ;;  %s5748_s12 = inlined_call_operand.hbm [shape: f32[2,1,32], index: 12, kind: input, shape index: {}]   ;;  %s5749_s13 = inlined_call_operand.hbm [shape: f32[2,8,32], index: 13, kind: output, shape index: {}]  }
   0x1   :  { %5786 = sst [smem:[#allocation42_spill]] %s5736_s0 }
   0x2   :  { %5787 = sst [smem:[#allocation43_spill]] %s5737_s1 }
   0x3   :  { %5788 = sst [smem:[#allocation44_spill]] %s5738_s2 }
   0x4   :  { %5789 = sst [smem:[#allocation45_spill]] %s5739_s3 }
   0x5   :  { %5790 = sst [smem:[#allocation46_spill]] %s5740_s4 }
   0x6   :  { %5791 = sst [smem:[#allocation47_spill]] %s5741_s5 }
   0x7   :  { %5792 = sst [smem:[#allocation48_spill]] %s5742_s6 }
   0x8   :  { %5793 = sst [smem:[#allocation49_spill]] %s5743_s7 }
   0x9   :  { %5794 = sst [smem:[#allocation50_spill]] %s5744_s8 }
   0xa   :  { %5795 = sst [smem:[#allocation51_spill]] %s5745_s9 }
   0xb   :  { %5796 = sst [smem:[#allocation52_spill]] %s5746_s10 }
   0xc   :  { %5797 = sst [smem:[#allocation53_spill]] %s5747_s11 }
   0xd   :  { %5798 = sst [smem:[#allocation54_spill]] %s5748_s12 }
   0xe   :  { %5799 = sst [smem:[#allocation55_spill]] %s5749_s13 }
   0xf   :  { %18 = vsyncpa [#allocation3], 0 }
  0x10   :  { %20 = vsyncpa [#allocation3 + $0x1], 0 }
  0x11   :  { %21 = vsyncpa [#allocation6], 0 }
  0x12   :  { %23 = vsyncpa [#allocation6 + $0x1], 0 }
  0x13   :  { %24 = vsyncpa [#allocation9], 0 }
  0x14   :  { %26 = vsyncpa [#allocation9 + $0x1], 0 }
  0x15   :  { %27 = vsyncpa [#allocation12], 0 }
  0x16   :  { %29 = vsyncpa [#allocation12 + $0x1], 0 }
  0x17   :  { %30 = vsyncpa [#allocation15], 0 }
  0x18   :  { %32 = vsyncpa [#allocation15 + $0x1], 0 }
  0x19   :  { %33 = vsyncpa [#allocation18], 0 }
  0x1a   :  { %35 = vsyncpa [#allocation18 + $0x1], 0 }
  0x1b   :  { %36 = vsyncpa [#allocation21], 0 }
  0x1c   :  { %38 = vsyncpa [#allocation21 + $0x1], 0 }
  0x1d   :  { %39 = vsyncpa [#allocation4], 0 }
  0x1e   :  { %41 = vsyncpa [#allocation4 + $0x1], 0  ;;  %s4735_s25 = smov 0   ;;  %s4737_s26 = smov 0  }
  0x1f   :  { %s4739_s27 = smov 0   ;;  %s4741_s28 = smov 0  }
  0x20   :  { %s4743_s29 = smov 0   ;;  %s4745_s30 = smov 0  }
  0x21   :  { %s4747_s14 = smov 0   ;;  %s4749_s15 = smov 0  }
  0x22   :  { %s4751_s16 = smov 0   ;;  %s4753_s17 = smov 0  }
  0x23   :  { %s4755_s18 = smov 0  }
  0x24 LB: > { %5800 = sst [smem:[#allocation32_spill]] %s4622_s30  ;;  %p5758_p0 = scmp.eq.s32.totalorder %s4642_s18, 0  ;;  %s4642_s18 = sphi %s4755_s18, %s47_s18   ;;  %s4638_s17 = sphi %s4753_s17, %s5871_s17   ;;  %s4634_s16 = sphi %s4751_s16, %s5863_s16   ;;  %s4630_s15 = sphi %s4749_s15, %s5870_s15   ;;  %s4626_s14 = sphi %s4747_s14, %s5861_s14   ;;  %s4622_s30 = sphi %s4745_s30, %s5860_s30   ;;  %s4618_s29 = sphi %s4743_s29, %s5869_s29   ;;  %s4614_s28 = sphi %s4741_s28, %s5868_s28   ;;  %s4610_s27 = sphi %s4739_s27, %s5867_s27   ;;  %s4606_s26 = sphi %s4737_s26, %s5866_s26   ;;  %s4602_s25 = sphi %s4735_s25, %s5865_s25  }
  0x25   : > { %5801 = sst [smem:[#allocation33_spill]] %s4626_s14  ;;  %p99_p1 = scmp.ne.s32.totalorder %s4610_s27, %s4606_s26 }
  0x26   : > { %5802 = sst [smem:[#allocation34_spill]] %s4630_s15  ;;  %p5757_p2 = scmp.lt.s32.totalorder %s4642_s18, 4 }
  0x27   : > { %5803 = sst [smem:[#allocation35_spill]] %s4634_s16  ;;  %p101_p3 = por %p99_p1, %p5758_p0 }
  0x28   : > { %5804 = sst [smem:[#allocation36_spill]] %s4638_s17  ;;  %s4797_s19 = sand.u32 1, %s4642_s18  }
  0x29   : > { %s4800_s20 = sand.u32 1, %s4610_s27   ;;  %s4806_s22 = sshll.u32 %s4634_s16, 11 }
  0x2a   : > { %s4803_s21 = sshll.u32 %s4800_s20, 7  ;;  %s5805_s1 = sld [smem:[#allocation43_spill]] }
  0x2b   : > { %s463_s15 = scalar_lea.vmem [#allocation5], %s4803_s21  ;;  %p4817_p4 = pnand %p5757_p2, %p101_p3 }
  0x2c   : > { %s470_s14 = sshll.u32 %s463_s15, 4  ;;  %s4821_s14 = int_to_ptr.vmem [resolvable:$true] %s470_s14 }
  0x2d   : > { %s5806_s12 = scalar_select %p4817_p4, 1, 0 }
  0x2e   : > { %p4828_p6 = pneg %p4817_p4 }
  0x30   : > { %s4812_s13 = scalar_lea.hbm %s5805_s1, %s4806_s22  ;;  %s4111_s6 = scalar_lea.hbm %s5805_s1, 4096 }
  0x31   : > { %s4106_s8 = scalar_lea.hbm %s4812_s13, 2048  ;;  %p4112_p9 = scmp.lt.u32.totalorder %s4812_s13, %s5805_s1 }
  0x32   : > { %p4107_p5 = scmp.ne.s32.totalorder %s4812_s13, %s4106_s8  ;;  %p4113_p10 = scmp.lt.u32.totalorder %s4111_s6, %s4106_s8 }
  0x33   : > { %p4115_p12 = scmp.lt.u32.totalorder %s4106_s8, %s4812_s13 }
  0x34   : > { %p4109_p7 = pnand %p4828_p6, %p4107_p5  ;;  %p4114_p11 = por %p4113_p10, %p4112_p9 }
  0x36   : > { %p4110_p8 = pneg %p4109_p7  ;;  %p4116_p13 = por %p4115_p12, %p4114_p11 }
  0x38   : > { %p4117_p1 = pnand %p4116_p13, %p4110_p8 }
  0x3a   : > { %4120 = shalt.err (!%p4117_p1)
}
  0x3b   : > { %s4121_s10 = scalar_lea.vmem %s4821_s14, 2048  ;;  %s4644_s15 = smov [#allocation5]  }
  0x3c   : > { %p4122_p3 = scmp.ne.s32.totalorder %s4821_s14, %s4121_s10  ;;  %s4126_s24 = sshll.u32 %s4644_s15, 4  ;;  %s4127_s24 = int_to_ptr.vmem [resolvable:$false] %s4126_s24 }
  0x3d   : > { %s4128_s2 = scalar_lea.vmem %s4127_s24, 4096  ;;  %p4129_p2 = scmp.lt.s32.totalorder %s4821_s14, %s4127_s24 }
  0x3e   : > { %p4124_p5 = pnand %p4122_p3, %p4828_p6  ;;  %p4130_p0 = scmp.lt.s32.totalorder %s4128_s2, %s4121_s10 }
  0x40   : > { %p4125_p7 = pneg %p4124_p5  ;;  %p4131_p9 = por %p4130_p0, %p4129_p2 }
  0x42   : > { %p4132_p10 = pnand %p4131_p9, %p4125_p7 }
  0x44   : > { %4135 = shalt.err (!%p4132_p10)
}
  0x45   : > { %s5760_s4 = smov 128   ;;  %s5762_s6 = smov 8  }
  0x46   : > { %s5808_s8 = scalar_lea.sflag [#allocation6], %s4797_s19  ;;  %p3436_p0 = scmp.ge.s32.totalorder %s4642_s18, 1 }
  0x47   : > { %3951 = dma.hbm_to_vmem [thread:$0]  (!%p4817_p4), %s4812_s13, 2048, %s4821_s14, %s5808_s8, %s5760_s4, %s5760_s4, %s5762_s6  }
  0x48   : > { %p697_p2 = scmp.lt.s32.totalorder %s4642_s18, 5  ;;  %s5811_s3 = sld [smem:[#allocation45_spill]] }
  0x49   : > { %s505_s1 = scalar_lea.vmem [#allocation8], %s4803_s21  ;;  %s5765_s13 = scalar_lea.sflag [#allocation9], %s4797_s19 }
  0x4a   : > { %p4858_p8 = pnand %p3436_p0, %p697_p2  ;;  %s512_s0 = sshll.u32 %s505_s1, 4  ;;  %s4869_s0 = int_to_ptr.vmem [resolvable:$true] %s512_s0 }
  0x4c   : > { %s5809_s10 = scalar_select %p4858_p8, 1, 0 }
  0x4e   : > { %5810 = sst [smem:[#allocation37_spill]] %s5809_s10  ;;  %s4866_s2 = scalar_lea.hbm %s5811_s3, %s4806_s22 }
  0x4f   : > { %s4136_s14 = scalar_lea.hbm %s4866_s2, 2048  ;;  %s4141_s15 = scalar_lea.hbm %s5811_s3, 4096 }
  0x50   : > { %p4137_p11 = scmp.ne.s32.totalorder %s4866_s2, %s4136_s14  ;;  %p4142_p1 = scmp.lt.u32.totalorder %s4866_s2, %s5811_s3 }
  0x51   : > { %p4143_p3 = scmp.lt.u32.totalorder %s4141_s15, %s4136_s14  ;;  %p4145_p7 = scmp.lt.u32.totalorder %s4136_s14, %s4866_s2 }
  0x52   : > { %p4139_p12 = pnand %p4137_p11, %p4828_p6 }
  0x53   : > { %p4144_p5 = por %p4143_p3, %p4142_p1 }
  0x54   : > { %p4140_p13 = pneg %p4139_p12 }
  0x55   : > { %p4146_p9 = por %p4145_p7, %p4144_p5 }
  0x57   : > { %p4147_p10 = pnand %p4146_p9, %p4140_p13 }
  0x59   : > { %4150 = shalt.err (!%p4147_p10)
}
  0x5a   : > { %s4151_s1 = scalar_lea.vmem %s4869_s0, 2048  ;;  %s4647_s4 = smov [#allocation8]  }
  0x5b   : > { %p4152_p0 = scmp.ne.s32.totalorder %s4869_s0, %s4151_s1  ;;  %s4156_s8 = sshll.u32 %s4647_s4, 4  ;;  %s4157_s8 = int_to_ptr.vmem [resolvable:$false] %s4156_s8 }
  0x5c   : > { %s4158_s6 = scalar_lea.vmem %s4157_s8, 4096  ;;  %p4159_p12 = scmp.lt.s32.totalorder %s4869_s0, %s4157_s8 }
  0x5d   : > { %p4154_p2 = pnand %p4152_p0, %p4828_p6  ;;  %p4160_p8 = scmp.lt.s32.totalorder %s4158_s6, %s4151_s1 }
  0x5f   : > { %p4155_p11 = pneg %p4154_p2  ;;  %p4161_p1 = por %p4160_p8, %p4159_p12 }
  0x61   : > { %p4162_p3 = pnand %p4161_p1, %p4155_p11 }
  0x63   : > { %4165 = shalt.err (!%p4162_p3)
}
  0x64   : > { %s5812_s14 = smov 8   ;;  %s5813_s15 = smov 128  }
  0x65   : > { %3957 = dma.hbm_to_vmem [thread:$0]  (!%p4817_p4), %s4866_s2, 2048, %s4869_s0, %s5765_s13, %s5813_s15, %s5813_s15, %s5812_s14  }
  0x66   : > { %s5814_s5 = sld [smem:[#allocation47_spill]]  ;;  %s547_s8 = scalar_lea.vmem [#allocation11], %s4803_s21 }
  0x67   : > { %s554_s6 = sshll.u32 %s547_s8, 4  ;;  %s5766_s3 = scalar_lea.sflag [#allocation12], %s4797_s19  ;;  %s4905_s6 = int_to_ptr.vmem [resolvable:$true] %s554_s6 }
  0x6c   : > { %s4902_s1 = scalar_lea.hbm %s5814_s5, %s4806_s22  ;;  %s4171_s24 = scalar_lea.hbm %s5814_s5, 4096 }
  0x6d   : > { %s4166_s10 = scalar_lea.hbm %s4902_s1, 2048  ;;  %p4172_p7 = scmp.lt.u32.totalorder %s4902_s1, %s5814_s5 }
  0x6e   : > { %p4167_p8 = scmp.ne.s32.totalorder %s4902_s1, %s4166_s10  ;;  %p4173_p9 = scmp.lt.u32.totalorder %s4171_s24, %s4166_s10 }
  0x6f   : > { %p4175_p0 = scmp.lt.u32.totalorder %s4166_s10, %s4902_s1 }
  0x70   : > { %p4169_p13 = pnand %p4167_p8, %p4828_p6  ;;  %p4174_p10 = por %p4173_p9, %p4172_p7 }
  0x72   : > { %p4170_p5 = pneg %p4169_p13  ;;  %p4176_p2 = por %p4175_p0, %p4174_p10 }
  0x74   : > { %p4177_p11 = pnand %p4176_p2, %p4170_p5 }
  0x76   : > { %4180 = shalt.err (!%p4177_p11)
}
  0x77   : > { %s4181_s21 = scalar_lea.vmem %s4905_s6, 2048  ;;  %s4648_s8 = smov [#allocation11]  }
  0x78   : > { %p4182_p12 = scmp.ne.s32.totalorder %s4905_s6, %s4181_s21  ;;  %s4186_s0 = sshll.u32 %s4648_s8, 4  ;;  %s4187_s0 = int_to_ptr.vmem [resolvable:$false] %s4186_s0 }
  0x79   : > { %s4188_s2 = scalar_lea.vmem %s4187_s0, 4096  ;;  %p4189_p8 = scmp.lt.s32.totalorder %s4905_s6, %s4187_s0 }
  0x7a   : > { %p4184_p1 = pnand %p4182_p12, %p4828_p6  ;;  %p4190_p13 = scmp.lt.s32.totalorder %s4188_s2, %s4181_s21 }
  0x7c   : > { %p4185_p3 = pneg %p4184_p1  ;;  %p4191_p7 = por %p4190_p13, %p4189_p8 }
  0x7e   : > { %p4192_p9 = pnand %p4191_p7, %p4185_p3 }
  0x80   : > { %4195 = shalt.err (!%p4192_p9)
}
  0x81   : > { %3963 = dma.hbm_to_vmem [thread:$0]  (!%p4817_p4), %s4902_s1, 2048, %s4905_s6, %s5766_s3, %s5813_s15, %s5813_s15, %s5812_s14  }
  0x82   : > { %s3424_s10 = sshll.u32 %s4800_s20, 5  ;;  %s3504_s24 = sshll.u32 %s4634_s16, 9 }
  0x83   : > { %s5815_s7 = sld [smem:[#allocation49_spill]]  ;;  %s589_s8 = scalar_lea.vmem [#allocation14], %s3424_s10 }
  0x84   : > { %s596_s0 = sshll.u32 %s589_s8, 4  ;;  %s5767_s2 = scalar_lea.sflag [#allocation15], %s4797_s19  ;;  %s4945_s0 = int_to_ptr.vmem [resolvable:$true] %s596_s0 }
  0x89   : > { %s4941_s21 = scalar_lea.hbm %s5815_s7, %s3504_s24  ;;  %s4201_s22 = scalar_lea.hbm %s5815_s7, 1024 }
  0x8a   : > { %s4196_s13 = scalar_lea.hbm %s4941_s21, 512  ;;  %p4202_p2 = scmp.lt.u32.totalorder %s4941_s21, %s5815_s7 }
  0x8b   : > { %p4197_p5 = scmp.ne.s32.totalorder %s4941_s21, %s4196_s13  ;;  %p4203_p11 = scmp.lt.u32.totalorder %s4201_s22, %s4196_s13 }
  0x8c   : > { %p4205_p1 = scmp.lt.u32.totalorder %s4196_s13, %s4941_s21 }
  0x8d   : > { %p4199_p10 = pnand %p4197_p5, %p4828_p6  ;;  %p4204_p12 = por %p4203_p11, %p4202_p2 }
  0x8f   : > { %p4200_p0 = pneg %p4199_p10  ;;  %p4206_p3 = por %p4205_p1, %p4204_p12 }
  0x91   : > { %p4207_p8 = pnand %p4206_p3, %p4200_p0 }
  0x93   : > { %4210 = shalt.err (!%p4207_p8)
}
  0x94   : > { %s4211_s8 = scalar_lea.vmem %s4945_s0, 512  ;;  %s4649_s1 = smov [#allocation14]  }
  0x95   : > { %p4212_p13 = scmp.ne.s32.totalorder %s4945_s0, %s4211_s8  ;;  %s4216_s6 = sshll.u32 %s4649_s1, 4  ;;  %s4217_s6 = int_to_ptr.vmem [resolvable:$false] %s4216_s6 }
  0x96   : > { %s4218_s3 = scalar_lea.vmem %s4217_s6, 1024  ;;  %p4219_p5 = scmp.lt.s32.totalorder %s4945_s0, %s4217_s6 }
  0x97   : > { %p4214_p7 = pnand %p4212_p13, %p4828_p6  ;;  %p4220_p10 = scmp.lt.s32.totalorder %s4218_s3, %s4211_s8 }
  0x99   : > { %p4215_p9 = pneg %p4214_p7  ;;  %p4221_p2 = por %p4220_p10, %p4219_p5 }
  0x9b   : > { %p4222_p11 = pnand %p4221_p2, %p4215_p9 }
  0x9d   : > { %4225 = shalt.err (!%p4222_p11)
}
  0x9e   : > { %3969 = dma.hbm_to_vmem [thread:$0]  (!%p4817_p4), %s4941_s21, 512, %s4945_s0, %s5767_s2, %s5813_s15, %s5813_s15, %s5812_s14  }
  0x9f   : > { %s5816_s9 = sld [smem:[#allocation51_spill]]  ;;  %s627_s8 = scalar_lea.vmem [#allocation17], %s3424_s10 }
  0xa0   : > { %s634_s1 = sshll.u32 %s627_s8, 4  ;;  %s5769_s6 = scalar_lea.sflag [#allocation18], %s4797_s19  ;;  %s4983_s1 = int_to_ptr.vmem [resolvable:$true] %s634_s1 }
  0xa5   : > { %s4979_s4 = scalar_lea.hbm %s5816_s9, %s3504_s24  ;;  %s4231_s24 = scalar_lea.hbm %s5816_s9, 1024 }
  0xa6   : > { %s4226_s3 = scalar_lea.hbm %s4979_s4, 512  ;;  %p4232_p3 = scmp.lt.u32.totalorder %s4979_s4, %s5816_s9 }
  0xa7   : > { %p4227_p0 = scmp.ne.s32.totalorder %s4979_s4, %s4226_s3  ;;  %p4233_p8 = scmp.lt.u32.totalorder %s4231_s24, %s4226_s3 }
  0xa8   : > { %p4235_p7 = scmp.lt.u32.totalorder %s4226_s3, %s4979_s4 }
  0xa9   : > { %p4229_p12 = pnand %p4227_p0, %p4828_p6  ;;  %p4234_p13 = por %p4233_p8, %p4232_p3 }
  0xab   : > { %p4230_p1 = pneg %p4229_p12  ;;  %p4236_p9 = por %p4235_p7, %p4234_p13 }
  0xad   : > { %p4237_p5 = pnand %p4236_p9, %p4230_p1 }
  0xaf   : > { %4240 = shalt.err (!%p4237_p5)
}
  0xb0   : > { %s4241_s10 = scalar_lea.vmem %s4983_s1, 512  ;;  %s4650_s8 = smov [#allocation17]  }
  0xb1   : > { %p4242_p10 = scmp.ne.s32.totalorder %s4983_s1, %s4241_s10  ;;  %s4246_s21 = sshll.u32 %s4650_s8, 4  ;;  %s4247_s21 = int_to_ptr.vmem [resolvable:$false] %s4246_s21 }
  0xb2   : > { %s4248_s0 = scalar_lea.vmem %s4247_s21, 1024  ;;  %p4249_p0 = scmp.lt.s32.totalorder %s4983_s1, %s4247_s21 }
  0xb3   : > { %p4244_p2 = pnand %p4242_p10, %p4828_p6  ;;  %p4250_p12 = scmp.lt.s32.totalorder %s4248_s0, %s4241_s10 }
  0xb5   : > { %p4245_p11 = pneg %p4244_p2  ;;  %p4251_p3 = por %p4250_p12, %p4249_p0 }
  0xb7   : > { %p4252_p8 = pnand %p4251_p3, %p4245_p11 }
  0xb9   : > { %4255 = shalt.err (!%p4252_p8)
}
  0xba   : > { %3975 = dma.hbm_to_vmem [thread:$0]  (!%p4817_p4), %s4979_s4, 512, %s4983_s1, %s5769_s6, %s5813_s15, %s5813_s15, %s5812_s14  }
  0xbb   : > { %s3432_s3 = sshll.u32 %s4800_s20, 6  ;;  %s3506_s24 = sshll.u32 %s4634_s16, 10 }
  0xbc   : > { %s5817_s11 = sld [smem:[#allocation53_spill]]  ;;  %s665_s8 = scalar_lea.vmem [#allocation20], %s3432_s3 }
  0xbd   : > { %s672_s21 = sshll.u32 %s665_s8, 4  ;;  %s5768_s0 = scalar_lea.sflag [#allocation21], %s4797_s19  ;;  %s5019_s21 = int_to_ptr.vmem [resolvable:$true] %s672_s21 }
  0xc2   : > { %s5017_s10 = scalar_lea.hbm %s5817_s11, %s3506_s24  ;;  %s4261_s13 = scalar_lea.hbm %s5817_s11, 2048 }
  0xc3   : > { %s4256_s2 = scalar_lea.hbm %s5017_s10, 1024  ;;  %p4262_p9 = scmp.lt.u32.totalorder %s5017_s10, %s5817_s11 }
  0xc4   : > { %p4257_p1 = scmp.ne.s32.totalorder %s5017_s10, %s4256_s2  ;;  %p4263_p5 = scmp.lt.u32.totalorder %s4261_s13, %s4256_s2 }
  0xc5   : > { %p4265_p2 = scmp.lt.u32.totalorder %s4256_s2, %s5017_s10 }
  0xc6   : > { %p4259_p13 = pnand %p4257_p1, %p4828_p6  ;;  %p4264_p10 = por %p4263_p5, %p4262_p9 }
  0xc8   : > { %p4260_p7 = pneg %p4259_p13  ;;  %p4266_p11 = por %p4265_p2, %p4264_p10 }
  0xca   : > { %p4267_p0 = pnand %p4266_p11, %p4260_p7 }
  0xcc   : > { %4270 = shalt.err (!%p4267_p0)
}
  0xcd   : > { %s4271_s3 = scalar_lea.vmem %s5019_s21, 1024  ;;  %s4651_s8 = smov [#allocation20]  }
  0xce   : > { %p4272_p12 = scmp.ne.s32.totalorder %s5019_s21, %s4271_s3  ;;  %s4276_s4 = sshll.u32 %s4651_s8, 4  ;;  %s4277_s4 = int_to_ptr.vmem [resolvable:$false] %s4276_s4 }
  0xcf   : > { %s4278_s1 = scalar_lea.vmem %s4277_s4, 2048  ;;  %p4279_p1 = scmp.lt.s32.totalorder %s5019_s21, %s4277_s4 }
  0xd0   : > { %p4274_p3 = pnand %p4272_p12, %p4828_p6  ;;  %p4280_p13 = scmp.lt.s32.totalorder %s4278_s1, %s4271_s3 }
  0xd2   : > { %p4275_p8 = pneg %p4274_p3  ;;  %p4281_p9 = por %p4280_p13, %p4279_p1 }
  0xd4   : > { %p4282_p5 = pnand %p4281_p9, %p4275_p8 }
  0xd6   : > { %4285 = shalt.err (!%p4282_p5)
}
  0xd7   : > { %3981 = dma.hbm_to_vmem [thread:$0]  (!%p4817_p4), %s5017_s10, 1024, %s5019_s21, %s5768_s0, %s5813_s15, %s5813_s15, %s5812_s14  }
  0xd8   : > { %s5049_s2 = sadd.s32 4294967295, %s4642_s18   ;;  %s3401_s13 = sadd.s32 4294967294, %s4642_s18  }
  0xd9   : > { %s56_s24 = sadd.s32 1, %s4634_s16  ;;  %s59_s22 = sadd.s32 1, %s4638_s17 }
  0xda   : > { %p57_p7 = scmp.ge.s32.totalorder %s56_s24, 2  ;;  %s66_s3 = sadd.s32 1, %s4622_s30 }
  0xdb   : > { %p73_p10 = scmp.ne.s32.totalorder %s4622_s30, %s4618_s29  ;;  %p79_p2 = scmp.ne.s32.totalorder %s4618_s29, %s4614_s28 }
  0xdc   : > { %s5873_s24 = smov (%p57_p7, %s56_s24), 0  ;;  %s5875_s22 = smov (!%p57_p7, %s59_s22), %s4638_s17 }
  0xdd   : > { %5818 = sst [smem:[#allocation38_spill]] %s5873_s24  ;;  %p5819_p11 = scmp.eq.s32.totalorder %s4642_s18, 0 }
  0xde   : > { %p80_p12 = scmp.eq.s32.totalorder %s5049_s2, 0  ;;  %p61_p3 = scmp.ge.s32.totalorder %s5875_s22, 2 }
  0xdf   : > { %p5067_p0 = por %p5819_p11, %p73_p10  ;;  %s89_s15 = ssub.s32 %s4634_s16, %s5873_s24 }
  0xe0   : > { %p5077_p8 = por %p80_p12, %p79_p2  ;;  %p90_p1 = scmp.eq.s32.totalorder %s89_s15, 0 }
  0xe1   : > { %s5877_s22 = smov (%p61_p3, %s5875_s22), 0  ;;  %s92_s21 = sadd.s32 1, %s4610_s27 }
  0xe2   : > { %s5821_s10 = scalar_select %p5077_p8, 1, 0 }
  0xe3   : > { %5822 = sst [smem:[#allocation39_spill]] %s5877_s22  ;;  %p105_p13 = scmp.ne.s32.totalorder %s4606_s26, %s4602_s25 }
  0xe4   : > { %s63_s8 = ssub.s32 %s4638_s17, %s5877_s22  ;;  %p415_p9 = scmp.eq.s32.totalorder %s5049_s2, 3 }
  0xe5   : > { %p64_p5 = scmp.eq.s32.totalorder %s63_s8, 0  ;;  %p5089_p7 = por %p105_p13, %p80_p12 }
  0xe6   : > { %s5094_s1 = scalar_select %p90_p1, %s4610_s27, %s92_s21  }
  0xe7   : > { %s5823_s4 = scalar_select %p5089_p7, 1, 0 }
  0xe8   : > { %5824 = sst [smem:[#allocation40_spill]] %s5094_s1  ;;  %p5102_p11 = por %p415_p9, %p73_p10 }
  0xe9   : > { %s5097_s0 = scalar_select %p64_p5, %s4622_s30, %s66_s3  }
  0xea   : > { %s5826_s15 = scalar_select %p5102_p11, 1, 0 }
  0xeb   : > { %5825 = sst [smem:[#allocation41_spill]] %s5097_s0  ;;  %p421_p3 = scmp.eq.s32.totalorder %s3401_s13, 3 }
  0xec   : > { %s441_s6 = sand.u32 1, %s4622_s30   ;;  %s3405_s25 = sshll.u32 %s4638_s17, 7 }
  0xed   : > { %p5111_p8 = por %p421_p3, %p79_p2  ;;  %s3404_s8 = sshll.u32 %s441_s6, 3 }
  0xee   : > { %s5828_s21 = sld [smem:[#allocation42_spill]]  ;;  %p5829_p12 = scmp.lt.s32.totalorder %s4642_s18, 4 }
  0xef   : > { %s5827_s5 = scalar_select %p5111_p8, 1, 0 }
  0xf0   : > { %p5124_p10 = pnand %p5829_p12, %p5067_p0  ;;  %s445_s3 = scalar_lea.vmem [#allocation2], %s3404_s8 }
  0xf1   : > { %s452_s22 = sshll.u32 %s445_s3, 4  ;;  %s5129_s24 = sshll.u32 %s4800_s20, 2  ;;  %s5131_s22 = int_to_ptr.vmem [resolvable:$true] %s452_s22 }
  0xf2   : > { %s442_s7 = scalar_lea.sflag [#allocation3], %s441_s6  ;;  %p4288_p1 = pneg %p5124_p10 }
  0xf4   : > { %s5118_s11 = scalar_lea.hbm %s5828_s21, %s3405_s25  ;;  %s4291_s17 = scalar_lea.hbm %s5828_s21, 256 }
  0xf5   : > { %s4286_s9 = scalar_lea.hbm %s5118_s11, 128  ;;  %p4292_p9 = scmp.lt.u32.totalorder %s5118_s11, %s5828_s21 }
  0xf6   : > { %p4287_p2 = scmp.ne.s32.totalorder %s5118_s11, %s4286_s9  ;;  %p4293_p5 = scmp.lt.u32.totalorder %s4291_s17, %s4286_s9 }
  0xf7   : > { %p4295_p12 = scmp.lt.u32.totalorder %s4286_s9, %s5118_s11 }
  0xf8   : > { %p4289_p13 = pnand %p4288_p1, %p4287_p2  ;;  %p4294_p3 = por %p4293_p5, %p4292_p9 }
  0xfa   : > { %p4290_p0 = pneg %p4289_p13  ;;  %p4296_p8 = por %p4295_p12, %p4294_p3 }
  0xfc   : > { %p4297_p11 = pnand %p4296_p8, %p4290_p0 }
  0xfe   : > { %4300 = shalt.err (!%p4297_p11)
}
  0xff   : > { %s4301_s6 = scalar_lea.vmem %s5131_s22, 128  ;;  %s4652_s3 = smov [#allocation2]  }
 0x100   : > { %p4302_p2 = scmp.ne.s32.totalorder %s5131_s22, %s4301_s6  ;;  %s4306_s14 = sshll.u32 %s4652_s3, 4  ;;  %s4307_s14 = int_to_ptr.vmem [resolvable:$false] %s4306_s14 }
 0x101   : > { %s4308_s0 = scalar_lea.vmem %s4307_s14, 256  ;;  %p4309_p4 = scmp.lt.s32.totalorder %s5131_s22, %s4307_s14 }
 0x102   : > { %p4304_p13 = pnand %p4302_p2, %p4288_p1  ;;  %p4310_p9 = scmp.lt.s32.totalorder %s4308_s0, %s4301_s6 }
 0x104   : > { %p4305_p7 = pneg %p4304_p13  ;;  %p4311_p5 = por %p4310_p9, %p4309_p4 }
 0x106   : > { %p4312_p3 = pnand %p4311_p5, %p4305_p7 }
 0x108   : > { %4315 = shalt.err (!%p4312_p3)
}
 0x109   : > { %3948 = dma.hbm_to_vmem [thread:$0]  (!%p5124_p10), %s5118_s11, 128, %s5131_s22, %s442_s7  }
 0x10a   : > { %s5159_s17 = sshll.u32 %s4634_s16, 6  ;;  %s5831_s8 = sld [smem:[#allocation44_spill]] }
 0x10b   : > { %s484_s6 = scalar_lea.vmem [#allocation7], %s5129_s24 }
 0x10c   : > { %s491_s13 = sshll.u32 %s484_s6, 4  ;;  %s5168_s13 = int_to_ptr.vmem [resolvable:$true] %s491_s13 }
 0x110   : > { %s5165_s3 = scalar_lea.hbm %s5831_s8, %s5159_s17  ;;  %s4321_s7 = scalar_lea.hbm %s5831_s8, 128 }
 0x111   : > { %s4316_s14 = scalar_lea.hbm %s5165_s3, 64  ;;  %p4322_p11 = scmp.lt.u32.totalorder %s5165_s3, %s5831_s8 }
 0x112   : > { %p4317_p4 = scmp.ne.s32.totalorder %s5165_s3, %s4316_s14  ;;  %p4323_p10 = scmp.lt.u32.totalorder %s4321_s7, %s4316_s14 }
 0x113   : > { %p4325_p0 = scmp.lt.u32.totalorder %s4316_s14, %s5165_s3 }
 0x114   : > { %p4319_p8 = pnand %p4317_p4, %p4828_p6  ;;  %p4324_p1 = por %p4323_p10, %p4322_p11 }
 0x116   : > { %p4320_p7 = pneg %p4319_p8  ;;  %p4326_p12 = por %p4325_p0, %p4324_p1 }
 0x118   : > { %p4327_p2 = pnand %p4326_p12, %p4320_p7 }
 0x11a   : > { %4330 = shalt.err (!%p4327_p2)
}
 0x11b   : > { %s4331_s25 = scalar_lea.vmem %s5168_s13, 64  ;;  %s4653_s6 = smov [#allocation7]  }
 0x11c   : > { %p4332_p13 = scmp.ne.s32.totalorder %s5168_s13, %s4331_s25  ;;  %s4336_s11 = sshll.u32 %s4653_s6, 4  ;;  %s4337_s11 = int_to_ptr.vmem [resolvable:$false] %s4336_s11 }
 0x11d   : > { %s4338_s22 = scalar_lea.vmem %s4337_s11, 128  ;;  %p4339_p3 = scmp.lt.s32.totalorder %s5168_s13, %s4337_s11 }
 0x11e   : > { %p4334_p9 = pnand %p4332_p13, %p4828_p6  ;;  %p4340_p4 = scmp.lt.s32.totalorder %s4338_s22, %s4331_s25 }
 0x120   : > { %p4335_p5 = pneg %p4334_p9  ;;  %p4341_p8 = por %p4340_p4, %p4339_p3 }
 0x122   : > { %p4342_p11 = pnand %p4341_p8, %p4335_p5 }
 0x124   : > { %4345 = shalt.err (!%p4342_p11)
}
 0x125   : > { %s4654_s14 = smov 16   ;;  %s4655_s7 = smov 1  }
 0x126   : > { %p5832_p7 = scmp.ne.s32.totalorder %s5806_s12, 0  ;;  %s5833_s0 = scalar_lea.sflag [#allocation6], %s4797_s19 }
 0x127   : > { %s5834_s6 = sld [smem:[#allocation46_spill]]  ;;  %s526_s22 = scalar_lea.vmem [#allocation10], %s5129_s24 }
 0x128   : > { %3954 = dma.hbm_to_vmem [thread:$0]  (!%p5832_p7), %s5165_s3, 64, %s5168_s13, %s5833_s0, %s4654_s14, %s4654_s14, %s4655_s7  }
 0x129   : > { %s533_s8 = sshll.u32 %s526_s22, 4  ;;  %s5203_s8 = int_to_ptr.vmem [resolvable:$true] %s533_s8 }
 0x12d   : > { %s5200_s11 = scalar_lea.hbm %s5834_s6, %s5159_s17  ;;  %s4351_s13 = scalar_lea.hbm %s5834_s6, 128 }
 0x12e   : > { %s4346_s21 = scalar_lea.hbm %s5200_s11, 64  ;;  %p4352_p12 = scmp.lt.u32.totalorder %s5200_s11, %s5834_s6 }
 0x12f   : > { %p4347_p10 = scmp.ne.s32.totalorder %s5200_s11, %s4346_s21  ;;  %p4353_p2 = scmp.lt.u32.totalorder %s4351_s13, %s4346_s21 }
 0x130   : > { %p4355_p9 = scmp.lt.u32.totalorder %s4346_s21, %s5200_s11 }
 0x131   : > { %p4349_p1 = pnand %p4347_p10, %p4828_p6  ;;  %p4354_p13 = por %p4353_p2, %p4352_p12 }
 0x133   : > { %p4350_p0 = pneg %p4349_p1  ;;  %p4356_p5 = por %p4355_p9, %p4354_p13 }
 0x135   : > { %p4357_p3 = pnand %p4356_p5, %p4350_p0 }
 0x137   : > { %4360 = shalt.err (!%p4357_p3)
}
 0x138   : > { %s4361_s25 = scalar_lea.vmem %s5203_s8, 64  ;;  %s4656_s30 = smov [#allocation10]  }
 0x139   : > { %p4362_p4 = scmp.ne.s32.totalorder %s5203_s8, %s4361_s25  ;;  %s4366_s22 = sshll.u32 %s4656_s30, 4  ;;  %s4367_s22 = int_to_ptr.vmem [resolvable:$false] %s4366_s22 }
 0x13a   : > { %s4368_s3 = scalar_lea.vmem %s4367_s22, 128  ;;  %p4369_p10 = scmp.lt.s32.totalorder %s5203_s8, %s4367_s22 }
 0x13b   : > { %p4364_p8 = pnand %p4362_p4, %p4828_p6  ;;  %p4370_p1 = scmp.lt.s32.totalorder %s4368_s3, %s4361_s25 }
 0x13d   : > { %p4365_p11 = pneg %p4364_p8  ;;  %p4371_p12 = por %p4370_p1, %p4369_p10 }
 0x13f   : > { %p4372_p2 = pnand %p4371_p12, %p4365_p11 }
 0x141   : > { %4375 = shalt.err (!%p4372_p2)
}
 0x142   : > { %s5835_s21 = scalar_lea.sflag [#allocation9], %s4797_s19  ;;  %s5836_s9 = sld [smem:[#allocation48_spill]] }
 0x143   : > { %3960 = dma.hbm_to_vmem [thread:$0]  (!%p5832_p7), %s5200_s11, 64, %s5203_s8, %s5835_s21, %s4654_s14, %s4654_s14, %s4655_s7  }
 0x144   : > { %s568_s30 = scalar_lea.vmem [#allocation13], %s5129_s24 }
 0x145   : > { %s575_s22 = sshll.u32 %s568_s30, 4  ;;  %s5238_s22 = int_to_ptr.vmem [resolvable:$true] %s575_s22 }
 0x148   : > { %s5235_s25 = scalar_lea.hbm %s5836_s9, %s5159_s17  ;;  %s4381_s11 = scalar_lea.hbm %s5836_s9, 128 }
 0x149   : > { %s4376_s3 = scalar_lea.hbm %s5235_s25, 64  ;;  %p4382_p5 = scmp.lt.u32.totalorder %s5235_s25, %s5836_s9 }
 0x14a   : > { %p4377_p0 = scmp.ne.s32.totalorder %s5235_s25, %s4376_s3  ;;  %p4383_p3 = scmp.lt.u32.totalorder %s4381_s11, %s4376_s3 }
 0x14b   : > { %p4385_p8 = scmp.lt.u32.totalorder %s4376_s3, %s5235_s25 }
 0x14c   : > { %p4379_p13 = pnand %p4377_p0, %p4828_p6  ;;  %p4384_p4 = por %p4383_p3, %p4382_p5 }
 0x14e   : > { %p4380_p9 = pneg %p4379_p13  ;;  %p4386_p11 = por %p4385_p8, %p4384_p4 }
 0x150   : > { %p4387_p10 = pnand %p4386_p11, %p4380_p9 }
 0x152   : > { %4390 = shalt.err (!%p4387_p10)
}
 0x153   : > { %s4391_s24 = scalar_lea.vmem %s5238_s22, 64  ;;  %s4657_s6 = smov [#allocation13]  }
 0x154   : > { %p4392_p1 = scmp.ne.s32.totalorder %s5238_s22, %s4391_s24  ;;  %s4396_s13 = sshll.u32 %s4657_s6, 4  ;;  %s4397_s13 = int_to_ptr.vmem [resolvable:$false] %s4396_s13 }
 0x155   : > { %s4398_s0 = scalar_lea.vmem %s4397_s13, 128  ;;  %p4399_p0 = scmp.lt.s32.totalorder %s5238_s22, %s4397_s13 }
 0x156   : > { %p4394_p12 = pnand %p4392_p1, %p4828_p6  ;;  %p4400_p13 = scmp.lt.s32.totalorder %s4398_s0, %s4391_s24 }
 0x158   : > { %p4395_p2 = pneg %p4394_p12  ;;  %p4401_p5 = por %p4400_p13, %p4399_p0 }
 0x15a   : > { %p4402_p3 = pnand %p4401_p5, %p4395_p2 }
 0x15c   : > { %4405 = shalt.err (!%p4402_p3)
}
 0x15d   : > { %s5837_s30 = scalar_lea.sflag [#allocation12], %s4797_s19  ;;  %s5267_s3 = sshll.u32 %s4634_s16, 4 }
 0x15e   : > { %3966 = dma.hbm_to_vmem [thread:$0]  (!%p5832_p7), %s5235_s25, 64, %s5238_s22, %s5837_s30, %s4654_s14, %s4654_s14, %s4655_s7  }
 0x15f   : > { %s609_s8 = scalar_lea.vmem [#allocation16], %s4800_s20  ;;  %s5838_s24 = sld [smem:[#allocation50_spill]] }
 0x160   : > { %s616_s11 = sshll.u32 %s609_s8, 4  ;;  %s617_s11 = int_to_ptr.vmem [resolvable:$true] %s616_s11 }
 0x165   : > { %s614_s6 = scalar_lea.hbm %s5838_s24, %s5267_s3  ;;  %s4411_s1 = scalar_lea.hbm %s5838_s24, 32 }
 0x166   : > { %s4406_s13 = scalar_lea.hbm %s614_s6, 16  ;;  %p4412_p11 = scmp.lt.u32.totalorder %s614_s6, %s5838_s24 }
 0x167   : > { %p4407_p9 = scmp.ne.s32.totalorder %s614_s6, %s4406_s13  ;;  %p4413_p10 = scmp.lt.u32.totalorder %s4411_s1, %s4406_s13 }
 0x168   : > { %p4415_p12 = scmp.lt.u32.totalorder %s4406_s13, %s614_s6 }
 0x169   : > { %p4409_p4 = pnand %p4407_p9, %p4828_p6  ;;  %p4414_p1 = por %p4413_p10, %p4412_p11 }
 0x16b   : > { %p4410_p8 = pneg %p4409_p4  ;;  %p4416_p2 = por %p4415_p12, %p4414_p1 }
 0x16d   : > { %p4417_p0 = pnand %p4416_p2, %p4410_p8 }
 0x16f   : > { %4420 = shalt.err (!%p4417_p0)
}
 0x170   : > { %s4421_s25 = scalar_lea.vmem %s617_s11, 16  ;;  %s4658_s22 = smov [#allocation16]  }
 0x171   : > { %p4422_p13 = scmp.ne.s32.totalorder %s617_s11, %s4421_s25  ;;  %s4426_s30 = sshll.u32 %s4658_s22, 4  ;;  %s4427_s30 = int_to_ptr.vmem [resolvable:$false] %s4426_s30 }
 0x172   : > { %s4428_s9 = scalar_lea.vmem %s4427_s30, 32  ;;  %p4429_p9 = scmp.lt.s32.totalorder %s617_s11, %s4427_s30 }
 0x173   : > { %p4424_p5 = pnand %p4422_p13, %p4828_p6  ;;  %p4430_p4 = scmp.lt.s32.totalorder %s4428_s9, %s4421_s25 }
 0x175   : > { %p4425_p3 = pneg %p4424_p5  ;;  %p4431_p7 = por %p4430_p4, %p4429_p9 }
 0x177   : > { %p4432_p10 = pnand %p4431_p7, %p4425_p3 }
 0x179   : > { %4435 = shalt.err (!%p4432_p10)
}
 0x17a   : > { %p5839_p11 = scmp.ne.s32.totalorder %s5806_s12, 0  ;;  %s5840_s1 = scalar_lea.sflag [#allocation15], %s4797_s19 }
 0x17b   : > { %s5841_s17 = sld [smem:[#allocation52_spill]]  ;;  %s647_s14 = scalar_lea.vmem [#allocation19], %s4800_s20 }
 0x17c   : > { %3972 = dma.hbm_to_vmem [thread:$0]  (!%p5839_p11), %s614_s6, 16, %s617_s11, %s5840_s1  }
 0x17d   : > { %s654_s7 = sshll.u32 %s647_s14, 4  ;;  %s5843_s30 = sld [smem:[#allocation54_spill]]  ;;  %s655_s7 = int_to_ptr.vmem [resolvable:$true] %s654_s7 }
 0x181   : > { %s5842_s13 = smov %s5841_s17  ;;  %s5292_s0 = scalar_lea.hbm %s5841_s17, %s5267_s3 }
 0x182   : > { %s4436_s16 = scalar_lea.hbm %s5292_s0, 16  ;;  %s4441_s1 = scalar_lea.hbm %s5842_s13, 32 }
 0x183   : > { %s5844_s9 = smov %s5843_s30  ;;  %s5299_s24 = scalar_lea.hbm %s5843_s30, %s5267_s3 }
 0x184   : > { %p4437_p7 = scmp.ne.s32.totalorder %s5292_s0, %s4436_s16  ;;  %p4442_p12 = scmp.lt.u32.totalorder %s5292_s0, %s5842_s13 }
 0x185   : > { %p4443_p2 = scmp.lt.u32.totalorder %s4441_s1, %s4436_s16  ;;  %p4445_p13 = scmp.lt.u32.totalorder %s4436_s16, %s5292_s0 }
 0x186   : > { %p4439_p8 = pnand %p4437_p7, %p4828_p6 }
 0x187   : > { %p4444_p0 = por %p4443_p2, %p4442_p12 }
 0x188   : > { %p4440_p1 = pneg %p4439_p8 }
 0x189   : > { %p4446_p5 = por %p4445_p13, %p4444_p0 }
 0x18b   : > { %p4447_p3 = pnand %p4446_p5, %p4440_p1 }
 0x18d   : > { %4450 = shalt.err (!%p4447_p3)
}
 0x18e   : > { %s4451_s3 = scalar_lea.vmem %s655_s7, 16  ;;  %s4659_s17 = smov [#allocation19]  }
 0x18f   : > { %p4452_p9 = scmp.ne.s32.totalorder %s655_s7, %s4451_s3  ;;  %s4456_s14 = sshll.u32 %s4659_s17, 4  ;;  %s4457_s14 = int_to_ptr.vmem [resolvable:$false] %s4456_s14 }
 0x190   : > { %s4458_s25 = scalar_lea.vmem %s4457_s14, 32  ;;  %p4459_p7 = scmp.lt.s32.totalorder %s655_s7, %s4457_s14 }
 0x191   : > { %p4454_p4 = pnand %p4452_p9, %p4828_p6  ;;  %p4460_p8 = scmp.lt.s32.totalorder %s4458_s25, %s4451_s3 }
 0x193   : > { %p4455_p10 = pneg %p4454_p4  ;;  %p4461_p11 = por %p4460_p8, %p4459_p7 }
 0x195   : > { %p4462_p2 = pnand %p4461_p11, %p4455_p10 }
 0x197   : > { %4465 = shalt.err (!%p4462_p2)
}
 0x198   : > { %p5845_p12 = scmp.ne.s32.totalorder %s5806_s12, 0  ;;  %s5846_s16 = scalar_lea.sflag [#allocation18], %s4797_s19 }
 0x199   : > { %s685_s22 = scalar_lea.vmem [#allocation22], %s4800_s20  ;;  %s4466_s11 = scalar_lea.hbm %s5299_s24, 16 }
 0x19a   : > { %3978 = dma.hbm_to_vmem [thread:$0]  (!%p5845_p12), %s5292_s0, 16, %s655_s7, %s5846_s16  }
 0x19b   : > { %s692_s30 = sshll.u32 %s685_s22, 4  ;;  %p4467_p1 = scmp.ne.s32.totalorder %s5299_s24, %s4466_s11  ;;  %s693_s30 = int_to_ptr.vmem [resolvable:$true] %s692_s30 }
 0x19c   : > { %s4471_s8 = scalar_lea.hbm %s5844_s9, 32  ;;  %p4472_p13 = scmp.lt.u32.totalorder %s5299_s24, %s5844_s9 }
 0x19d   : > { %p4469_p11 = pnand %p4467_p1, %p4828_p6  ;;  %p4473_p5 = scmp.lt.u32.totalorder %s4471_s8, %s4466_s11 }
 0x19e   : > { %p4475_p9 = scmp.lt.u32.totalorder %s4466_s11, %s5299_s24 }
 0x19f   : > { %p4470_p0 = pneg %p4469_p11  ;;  %p4474_p3 = por %p4473_p5, %p4472_p13 }
 0x1a1   : > { %p4476_p4 = por %p4475_p9, %p4474_p3 }
 0x1a3   : > { %p4477_p10 = pnand %p4476_p4, %p4470_p0 }
 0x1a5   : > { %4480 = shalt.err (!%p4477_p10)
}
 0x1a6   : > { %s4481_s20 = scalar_lea.vmem %s693_s30, 16  ;;  %s4660_s0 = smov [#allocation22]  }
 0x1a7   : > { %p4482_p7 = scmp.ne.s32.totalorder %s693_s30, %s4481_s20  ;;  %s4486_s7 = sshll.u32 %s4660_s0, 4  ;;  %s4487_s7 = int_to_ptr.vmem [resolvable:$false] %s4486_s7 }
 0x1a8   : > { %s4488_s17 = scalar_lea.vmem %s4487_s7, 32  ;;  %p4489_p1 = scmp.lt.s32.totalorder %s693_s30, %s4487_s7 }
 0x1a9   : > { %p4484_p8 = pnand %p4482_p7, %p4828_p6  ;;  %p4490_p11 = scmp.lt.s32.totalorder %s4488_s17, %s4481_s20 }
 0x1ab   : > { %p4485_p2 = pneg %p4484_p8  ;;  %p4491_p12 = por %p4490_p11, %p4489_p1 }
 0x1ad   : > { %p4492_p5 = pnand %p4491_p12, %p4485_p2 }
 0x1af   : > { %4495 = shalt.err (!%p4492_p5)
}
 0x1b0   : > { %p5847_p13 = scmp.ne.s32.totalorder %s5806_s12, 0  ;;  %s5848_s14 = scalar_lea.sflag [#allocation21], %s4797_s19 }
 0x1b1   : > { %s5849_s25 = sld [smem:[#allocation37_spill]] }
 0x1b2   : > { %3984 = dma.hbm_to_vmem [thread:$0]  (!%p5847_p13), %s5299_s24, 16, %s693_s30, %s5848_s14  }
 0x1b7   : > { %p5850_p0 = scmp.ne.s32.totalorder %s5849_s25, 0 }
 0x1b8   : > { %s5343_s23 = sand.u32 (!%p5850_p0), 1, %s4618_s29   ;;  %p5851_p6 = scmp.ne.s32.totalorder (!%p5850_p0), %s5821_s10, 0 }
 0x1b9   : > { %701 = sbr.rel (%p5850_p0) target bundleno = 2763 (0xacb), region = 72  ;;  %s3437_s16 = sshll.u32 (!%p5850_p0), %s5343_s23, 3 }
 0x1ba   : > { %s704_s22 = scalar_lea.sflag (!%p5850_p0), [#allocation3], %s5343_s23  ;;  %s5349_s11 = scalar_lea.vmem (!%p5850_p0), [#allocation2], %s3437_s16 }
 0x1c0   : > { %4569 = dma.done.wait (%p5851_p6), %s704_s22, 128  }
 0x1c1   : > { %4571 = vsyncadd (%p5851_p6), %s704_s22, 4294967168  ;;  %s5356_s12 = sand.u32 1, %s5049_s2   ;;  %s5359_s19 = sand.u32 1, %s4606_s26  }
 0x1c2   : > { %s3438_s24 = sshll.u32 %s5359_s19, 7  ;;  %s713_s30 = scalar_lea.sflag [#allocation6], %s5356_s12 }
 0x1c3   : > { %s5363_s6 = scalar_lea.vmem [#allocation5], %s3438_s24  ;;  %p5852_p12 = scmp.ne.s32.totalorder %s5823_s4, 0 }
 0x1c5   : > { %4573 = dma.done.wait (%p5852_p12), %s713_s30, 2112  }
 0x1c6   : > { %4575 = vsyncadd (%p5852_p12), %s713_s30, 4294965184  ;;  %s3439_s10 = sshll.u32 %s5359_s19, 2  ;;  %s731_s2 = scalar_lea.sflag [#allocation9], %s5356_s12 }
 0x1c7   : > { %s5370_s1 = scalar_lea.vmem [#allocation7], %s3439_s10  ;;  %s5373_s8 = scalar_lea.vmem [#allocation8], %s3438_s24 }
 0x1c8   : > { %4577 = dma.done.wait (%p5852_p12), %s731_s2, 2112  }
 0x1c9   : > { %4579 = vsyncadd (%p5852_p12), %s731_s2, 4294965184  ;;  %s5379_s21 = scalar_lea.vmem [#allocation10], %s3439_s10  ;;  %s749_s3 = scalar_lea.sflag [#allocation12], %s5356_s12 }
 0x1ca   : > { %s5382_s20 = scalar_lea.vmem [#allocation11], %s3438_s24 }
 0x1cb   : > { %4581 = dma.done.wait (%p5852_p12), %s749_s3, 2112  }
 0x1cc   : > { %4583 = vsyncadd (%p5852_p12), %s749_s3, 4294965184  ;;  %s3444_s0 = sshll.u32 %s5359_s19, 5  ;;  %s5389_s7 = scalar_lea.vmem [#allocation13], %s3439_s10 }
 0x1cd   : > { %s767_s17 = scalar_lea.sflag [#allocation15], %s5356_s12  ;;  %s5392_s14 = scalar_lea.vmem [#allocation14], %s3444_s0 }
 0x1ce   : > { %4585 = dma.done.wait (%p5852_p12), %s767_s17, 528  }
 0x1cf   : > { %4587 = vsyncadd (%p5852_p12), %s767_s17, 4294966768  ;;  %s778_s25 = scalar_lea.vmem [#allocation16], %s5359_s19  ;;  %s784_s22 = scalar_lea.sflag [#allocation18], %s5356_s12 }
 0x1d0   : > { %s5400_s24 = scalar_lea.vmem [#allocation17], %s3444_s0 }
 0x1d1   : > { %4589 = dma.done.wait (%p5852_p12), %s784_s22, 528  }
 0x1d2   : > { %4591 = vsyncadd (%p5852_p12), %s784_s22, 4294966768  ;;  %s3446_s30 = sshll.u32 %s5359_s19, 6  ;;  %s795_s10 = scalar_lea.vmem [#allocation19], %s5359_s19 }
 0x1d3   : > { %s801_s2 = scalar_lea.sflag [#allocation21], %s5356_s12  ;;  %s5409_s3 = scalar_lea.vmem [#allocation20], %s3446_s30 }
 0x1d4   : > { %4593 = dma.done.wait (%p5852_p12), %s801_s2, 1040  }
 0x1d5   : > { %4595 = vsyncadd (%p5852_p12), %s801_s2, 4294966256  ;;  %s812_s0 = scalar_lea.vmem [#allocation22], %s5359_s19  ;;  %s5418_s17 = scalar_lea.vmem [#allocation23], %s3437_s16 }
 0x1d6   : > { %s5853_s22 = sld [smem:[#allocation33_spill]] }
 0x1dc   : > { %p3448_p3 = scmp.ne.s32.totalorder %s5853_s22, 0 }
 0x1dd   : > { %v916_v0 = vld [vmem:[%s5349_s11] sm:$0xff] (!%p3448_p3)  ;;  %vm917_vm0 = vcmask (!%p3448_p3), 261120  }
 0x1de   : > { %915 = sbr.rel (%p3448_p3) target bundleno = 485 (0x1e5), region = 128  ;;  %918 = vst.msk [vmem:[%s5418_s17] sm:$0xff] (!%p3448_p3), %vm917_vm0, %v916_v0 }
 0x1e5 PF: > { %v920_v1 = vld [vmem:[%s5363_s6] sm:$0xff]  ;;  %v921_v2 = vld [vmem:[%s5363_s6 + $0x8] sm:$0xff]  ;;  %v4661_v4 = vmov 0.0|0.0   ;;  %v922_v7 = vld [vmem:[%s5363_s6 + $0x10] sm:$0xff]  ;;  %vm4662_vm1 = vmmov 0   ;;  %v4663_v12 = vmov 0.0  }
 0x1e6   : > { %v924_v3 = vld [vmem:[%s5363_s6 + $0x20] sm:$0xff]  ;;  %3827 = vmatprep.subr.bf16.mxu0 %v4661_v4  ;;  %3833 = vmatprep.subr.bf16.mxu1 %v4661_v4  ;;  %v3828_v5 = vpack.c.bf16 %v921_v2, %v920_v1  ;;  %v925_v6 = vld [vmem:[%s5363_s6 + $0x28] sm:$0xff]  ;;  %v923_v8 = vld [vmem:[%s5363_s6 + $0x18] sm:$0xff]  ;;  %vm964_vm2 = vcmask 261120   ;;  %vm1896_vm3 = vcmask 64512   ;;  %vm2967_vm4 = vcmask 523264  }
 0x1e7   : > { %v3834_v9 = vpack.c.bf16 %v925_v6, %v924_v3  ;;  %v926_v10 = vld [vmem:[%s5363_s6 + $0x30] sm:$0xff]  ;;  %v927_v11 = vld [vmem:[%s5363_s6 + $0x38] sm:$0xff]  ;;  %3613 = vmatprep.mubr.msk.f32.mxu0 %vm4662_vm1, %v4663_v12  ;;  %3624 = vmatprep.mubr.msk.f32.mxu1 %vm4662_vm1, %v4663_v12  ;;  %v3831_v13 = vpack.c.bf16 %v923_v8, %v922_v7  ;;  %v928_v15 = vld [vmem:[%s5363_s6 + $0x40] sm:$0xff]  ;;  %s5854_s4 = sld [smem:[#allocation34_spill]]  ;;  %s3070_s11 = sshll.u32 %s5418_s17, 4  ;;  %s5673_s11 = int_to_ptr.vmem [resolvable:$true] %s3070_s11 }
 0x1e8   : > { %3829 = vmatpush3.bf16.msra.mxu0 %v3828_v5  ;;  %v3837_v14 = vpack.c.bf16 %v927_v11, %v926_v10  ;;  %v929_v16 = vld [vmem:[%s5363_s6 + $0x48] sm:$0xff]  ;;  %v932_v17 = vld [vmem:[%s5363_s6 + $0x60] sm:$0xff]  ;;  %v930_v22 = vld [vmem:[%s5363_s6 + $0x50] sm:$0xff]  ;;  %p5856_p4 = scmp.ne.s32.totalorder %s5826_s15, 0 }
 0x1e9   : > { %3835 = vmatpush3.bf16.msra.mxu1 %v3834_v9  ;;  %3830 = vmatprep.subr.bf16.mxu0 %v4661_v4  ;;  %v933_v18 = vld [vmem:[%s5363_s6 + $0x68] sm:$0xff]  ;;  %v3840_v20 = vpack.c.bf16 %v929_v16, %v928_v15  ;;  %v931_v23 = vld [vmem:[%s5363_s6 + $0x58] sm:$0xff]  ;;  %v934_v24 = vld [vmem:[%s5363_s6 + $0x70] sm:$0xff] }
 0x1ea   : > { %3836 = vmatprep.subr.bf16.mxu1 %v4661_v4  ;;  %v5444_v19 = vld [vmem:[%s5418_s17] sm:$0xff]  ;;  %v3846_v21 = vpack.c.bf16 %v933_v18, %v932_v17  ;;  %v3843_v26 = vpack.c.bf16 %v931_v23, %v930_v22  ;;  %v1249_v29 = vld [vmem:[%s5373_s8 + $0x8] sm:$0xff] }
 0x1eb   : > { %v935_v25 = vld [vmem:[%s5363_s6 + $0x78] sm:$0xff]  ;;  %v1248_v28 = vld [vmem:[%s5373_s8] sm:$0xff]  ;;  %v1253_v31 = vld [vmem:[%s5373_s8 + $0x28] sm:$0xff]  ;;  %s5855_s6 = sld [smem:[#allocation55_spill]] }
 0x1ec   : > { %3832 = vmatpush3.bf16.msra.mxu0 %v3831_v13  ;;  %v3849_v27 = vpack.c.bf16 %v935_v25, %v934_v24  ;;  %v1252_v30 = vld [vmem:[%s5373_s8 + $0x20] sm:$0xff]  ;;  %v3852_v32 = vpack.c.bf16 %v1249_v29, %v1248_v28  ;;  %v1250_v34 = vld [vmem:[%s5373_s8 + $0x10] sm:$0xff]  ;;  %v1251_v35 = vld [vmem:[%s5373_s8 + $0x18] sm:$0xff] }
 0x1ed   : > { %3838 = vmatpush3.bf16.msra.mxu1 %v3837_v14  ;;  %3839 = vmatprep.subr.bf16.mxu0 %v4661_v4  ;;  %v3858_v33 = vpack.c.bf16 %v1253_v31, %v1252_v30  ;;  %v1254_v36 = vld [vmem:[%s5373_s8 + $0x30] sm:$0xff]  ;;  %v1255_v37 = vld [vmem:[%s5373_s8 + $0x38] sm:$0xff]  ;;  %v3855_v38 = vpack.c.bf16 %v1251_v35, %v1250_v34  ;;  %v1256_v40 = vld [vmem:[%s5373_s8 + $0x40] sm:$0xff]  ;;  %s3495_s16 = sshll.u32 %s5854_s4, 7 }
 0x1ee   : > { %3845 = vmatprep.subr.bf16.mxu1 %v4661_v4  ;;  %v3861_v39 = vpack.c.bf16 %v1255_v37, %v1254_v36  ;;  %v1257_v41 = vld [vmem:[%s5373_s8 + $0x48] sm:$0xff]  ;;  %v1260_v42 = vld [vmem:[%s5373_s8 + $0x60] sm:$0xff]  ;;  %v1258_v46 = vld [vmem:[%s5373_s8 + $0x50] sm:$0xff] }
 0x1ef   : > { %3614 = vmatmul.mubr.msk.f32.vlgmr.msra.gmra.mrb[0].mxu0 %vm964_vm2, %v5444_v19  ;;  %v1261_v43 = vld [vmem:[%s5373_s8 + $0x68] sm:$0xff]  ;;  %v3864_v44 = vpack.c.bf16 %v1257_v41, %v1256_v40  ;;  %v1259_v47 = vld [vmem:[%s5373_s8 + $0x58] sm:$0xff]  ;;  %v1262_v48 = vld [vmem:[%s5373_s8 + $0x70] sm:$0xff] }
 0x1f0   : > { %3625 = vmatmul.mubr.msk.f32.vlgmr.msra.gmra.mrb[0].mxu1 %vm964_vm2, %v5444_v19  ;;  %3841 = vmatpush3.bf16.msra.mxu0 %v3840_v20  ;;  %v3870_v45 = vpack.c.bf16 %v1261_v43, %v1260_v42  ;;  %v1263_v49 = vld [vmem:[%s5373_s8 + $0x78] sm:$0xff]  ;;  %v3867_v50 = vpack.c.bf16 %v1259_v47, %v1258_v46  ;;  %v1572_v52 = vld [vmem:[%s5382_s20] sm:$0xff]  ;;  %v1573_v53 = vld [vmem:[%s5382_s20 + $0x8] sm:$0xff]  ;;  %s3057_s8 = scalar_lea.sflag [#allocation4], %s5343_s23 }
 0x1f1   : > { %3847 = vmatpush3.bf16.msra.mxu1 %v3846_v21  ;;  %3842 = vmatprep.subr.bf16.mxu0 %v4661_v4  ;;  %v3873_v51 = vpack.c.bf16 %v1263_v49, %v1262_v48  ;;  %v3876_v54 = vpack.c.bf16 %v1573_v53, %v1572_v52  ;;  %v1574_v55 = vld [vmem:[%s5382_s20 + $0x10] sm:$0xff]  ;;  %v1575_v56 = vld [vmem:[%s5382_s20 + $0x18] sm:$0xff]  ;;  %v1576_v58 = vld [vmem:[%s5382_s20 + $0x20] sm:$0xff] }
 0x1f2   : > { %3848 = vmatprep.subr.bf16.mxu1 %v4661_v4  ;;  %3635 = vmatprep.mubr.msk.f32.mxu0 %vm4662_vm1, %v4663_v12  ;;  %v3879_v57 = vpack.c.bf16 %v1575_v56, %v1574_v55  ;;  %v1577_v59 = vld [vmem:[%s5382_s20 + $0x28] sm:$0xff]  ;;  %v1580_v60 = vld [vmem:[%s5382_s20 + $0x40] sm:$0xff]  ;;  %v1578_v0 = vld [vmem:[%s5382_s20 + $0x30] sm:$0xff] }
 0x1f3   : > { %3646 = vmatprep.mubr.msk.f32.mxu1 %vm4662_vm1, %v4663_v12  ;;  %v3882_v61 = vpack.c.bf16 %v1577_v59, %v1576_v58  ;;  %v1581_v62 = vld [vmem:[%s5382_s20 + $0x48] sm:$0xff]  ;;  %v1579_v1 = vld [vmem:[%s5382_s20 + $0x38] sm:$0xff]  ;;  %v1582_v2 = vld [vmem:[%s5382_s20 + $0x50] sm:$0xff] }
 0x1f4   : > { %3844 = vmatpush3.bf16.msra.mxu0 %v3843_v26  ;;  %v3888_v63 = vpack.c.bf16 %v1581_v62, %v1580_v60  ;;  %v3885_v3 = vpack.c.bf16 %v1579_v1, %v1578_v0  ;;  %v1583_v5 = vld [vmem:[%s5382_s20 + $0x58] sm:$0xff]  ;;  %v1584_v7 = vld [vmem:[%s5382_s20 + $0x60] sm:$0xff]  ;;  %v1585_v8 = vld [vmem:[%s5382_s20 + $0x68] sm:$0xff] }
 0x1f5   : > { %3850 = vmatpush3.bf16.msra.mxu1 %v3849_v27  ;;  %3851 = vmatprep.subr.bf16.mxu0 %v4661_v4  ;;  %v3891_v6 = vpack.c.bf16 %v1583_v5, %v1582_v2  ;;  %v3894_v9 = vpack.c.bf16 %v1585_v8, %v1584_v7  ;;  %v1586_v10 = vld [vmem:[%s5382_s20 + $0x70] sm:$0xff]  ;;  %v1587_v11 = vld [vmem:[%s5382_s20 + $0x78] sm:$0xff]  ;;  %v3465_v47 = vld [vmem:[%s5389_s7] ss:$0 sm:$0xff]  ;;  %s4664_s20 = smov [#allocation23]  }
 0x1f6   : > { %3857 = vmatprep.subr.bf16.mxu1 %v4661_v4  ;;  %v3897_v13 = vpack.c.bf16 %v1587_v11, %v1586_v10  ;;  %v3457_v23 = vld [vmem:[%s5379_s21] ss:$0 sm:$0xff]  ;;  %v3458_v25 = vld [vmem:[%s5379_s21 + $0x1] ss:$0 sm:$0xff]  ;;  %v3449_v26 = vld [vmem:[%s5370_s1] ss:$0 sm:$0xff] }
 0x1f7   : > { %3636 = vmatmul.mubr.msk.f32.vlgmr.msra.gmra.mrb[2].mxu0 %vm964_vm2, %v5444_v19  ;;  %v3459_v34 = vld [vmem:[%s5379_s21 + $0x2] ss:$0 sm:$0xff]  ;;  %v3460_v35 = vld [vmem:[%s5379_s21 + $0x3] ss:$0 sm:$0xff]  ;;  %v3452_v42 = vld [vmem:[%s5370_s1 + $0x3] ss:$0 sm:$0xff] }
 0x1f8   : > { %3647 = vmatmul.mubr.msk.f32.vlgmr.msra.gmra.mrb[2].mxu1 %vm964_vm2, %v5444_v19  ;;  %3853 = vmatpush3.bf16.msra.mxu0 %v3852_v32  ;;  %s4496_s21 = scalar_lea.vmem %s5673_s11, 128 }
 0x1f9   : > { %3859 = vmatpush3.bf16.msra.mxu1 %v3858_v33  ;;  %3854 = vmatprep.subr.bf16.mxu0 %v4661_v4  ;;  %v3450_v33 = vld [vmem:[%s5370_s1 + $0x1] ss:$0 sm:$0xff]  ;;  %p4497_p9 = scmp.ne.s32.totalorder %s5673_s11, %s4496_s21 }
 0x1fa   : > { %3860 = vmatprep.subr.bf16.mxu1 %v4661_v4  ;;  %3657 = vmatprep.mubr.msk.f32.mxu0 %vm4662_vm1, %v4663_v12 }
 0x1fb   : > { %3668 = vmatprep.mubr.msk.f32.mxu1 %vm4662_vm1, %v4663_v12  ;;  %p4498_p10 = pnand %p4497_p9, %p5856_p4 }
 0x1fc   : > { %3856 = vmatpush3.bf16.msra.mxu0 %v3855_v38  ;;  %v3451_v38 = vld [vmem:[%s5370_s1 + $0x2] ss:$0 sm:$0xff]  ;;  %s5671_s1 = scalar_lea.hbm %s5855_s6, %s3495_s16 }
 0x1fd   : > { %3862 = vmatpush3.bf16.msra.mxu1 %v3861_v39  ;;  %3863 = vmatprep.subr.bf16.mxu0 %v4661_v4  ;;  %p4499_p7 = pneg %p4498_p10 }
 0x1fe   : > { %3869 = vmatprep.subr.bf16.mxu1 %v4661_v4 }
 0x1ff   : > { %3658 = vmatmul.mubr.msk.f32.vlgmr.msra.gmra.mrb[4].mxu0 %vm964_vm2, %v5444_v19 }
 0x200   : > { %3669 = vmatmul.mubr.msk.f32.vlgmr.msra.gmra.mrb[4].mxu1 %vm964_vm2, %v5444_v19  ;;  %3865 = vmatpush3.bf16.msra.mxu0 %v3864_v44 }
 0x201   : > { %3871 = vmatpush3.bf16.msra.mxu1 %v3870_v45  ;;  %3866 = vmatprep.subr.bf16.mxu0 %v4661_v4 }
 0x202   : > { %3872 = vmatprep.subr.bf16.mxu1 %v4661_v4  ;;  %3679 = vmatprep.mubr.msk.f32.mxu0 %vm4662_vm1, %v4663_v12 }
 0x203   : > { %3690 = vmatprep.mubr.msk.f32.mxu1 %vm4662_vm1, %v4663_v12 }
 0x204   : > { %3868 = vmatpush3.bf16.msra.mxu0 %v3867_v50 }
 0x205   : > { %3874 = vmatpush3.bf16.msra.mxu1 %v3873_v51  ;;  %3875 = vmatprep.subr.bf16.mxu0 %v4661_v4  ;;  %v3466_v51 = vld [vmem:[%s5389_s7 + $0x1] ss:$0 sm:$0xff] }
 0x206   : > { %3881 = vmatprep.subr.bf16.mxu1 %v4661_v4 }
 0x207   : > { %3680 = vmatmul.mubr.msk.f32.vlgmr.msra.gmra.mrb[6].mxu0 %vm964_vm2, %v5444_v19 }
 0x208   : > { %3691 = vmatmul.mubr.msk.f32.vlgmr.msra.gmra.mrb[6].mxu1 %vm964_vm2, %v5444_v19  ;;  %3877 = vmatpush3.bf16.msra.mxu0 %v3876_v54 }
 0x209   : > { %3878 = vmatprep.subr.bf16.mxu0 %v4661_v4  ;;  %3701 = vmatprep.mubr.msk.f32.mxu0 %vm4662_vm1, %v4663_v12 }
 0x20a   : > { %3712 = vmatprep.mubr.msk.f32.mxu1 %vm4662_vm1, %v4663_v12  ;;  %3883 = vmatpush3.bf16.msra.mxu1 %v3882_v61 }
 0x20b   : > { %3884 = vmatprep.subr.bf16.mxu1 %v4661_v4 }
 0x20c   : > { %3880 = vmatpush3.bf16.msra.mxu0 %v3879_v57 }
 0x20d   : > { %3887 = vmatprep.subr.bf16.mxu0 %v4661_v4 }
 0x20e   : > { %3886 = vmatpush3.bf16.msra.mxu1 %v3885_v3 }
 0x20f   : > { %3702 = vmatmul.mubr.msk.f32.vlgmr.msra.gmra.mrb[8].mxu0 %vm964_vm2, %v5444_v19  ;;  %3893 = vmatprep.subr.bf16.mxu1 %v4661_v4 }
 0x210   : > { %3889 = vmatpush3.bf16.msra.mxu0 %v3888_v63  ;;  %3723 = vmatprep.mubr.msk.f32.mxu0 %vm4662_vm1, %v4663_v12 }
 0x211   : > { %3890 = vmatprep.subr.bf16.mxu0 %v4661_v4  ;;  %3713 = vmatmul.mubr.msk.f32.vlgmr.msra.gmra.mrb[8].mxu1 %vm964_vm2, %v5444_v19 }
 0x212   : > { %3895 = vmatpush3.bf16.msra.mxu1 %v3894_v9  ;;  %3734 = vmatprep.mubr.msk.f32.mxu1 %vm4662_vm1, %v4663_v12 }
 0x213   : > { %3896 = vmatprep.subr.bf16.mxu1 %v4661_v4 }
 0x214   : > { %3892 = vmatpush3.bf16.msra.mxu0 %v3891_v6 }
 0x215   : > { %3737 = vmatprep.subr.mxu0 %v4663_v12 }
 0x216   : > { %3898 = vmatpush3.bf16.msra.mxu1 %v3897_v13 }
 0x217   : > { %3724 = vmatmul.mubr.msk.f32.vlgmr.msra.gmra.mrb[10].mxu0 %vm964_vm2, %v5444_v19  ;;  %3752 = vmatprep.subr.mxu1 %v4663_v12 }
 0x218   : > { %3739 = vmatprep.mubr.msk.f32.mxu0 %vm4662_vm1, %v4663_v12 }
 0x219   : > { %3735 = vmatmul.mubr.msk.f32.vlgmr.msra.gmra.mrb[10].mxu1 %vm964_vm2, %v5444_v19 }
 0x21a   : > { %3754 = vmatprep.mubr.msk.f32.mxu1 %vm4662_vm1, %v4663_v12 }
 0x2c2   : > { %v1034_v14 = vpop.f32.mrb[0].mxu0 }
 0x2c3   : > { %v3615_v15 = vpop.f32.mrb[1].mxu0  ;;  %v1104_v16 = vpop.f32.mrb[0].mxu1  ;;  %v1035_v32 = vadd.f32 %v3449_v26, %v1034_v14 }
 0x2c4   : > { %v3626_v17 = vpop.f32.mrb[1].mxu1  ;;  %v1105_v36 = vadd.f32 %v3450_v33, %v1104_v16 }
 0x2ca   : > { %v1174_v18 = vpop.f32.mrb[2].mxu0 }
 0x2cb   : > { %v3637_v20 = vpop.f32.mrb[3].mxu0  ;;  %v1244_v21 = vpop.f32.mrb[2].mxu1  ;;  %v1175_v45 = vadd.f32 %v3451_v38, %v1174_v18 }
 0x2cc   : > { %v3648_v22 = vpop.f32.mrb[3].mxu1  ;;  %v1245_v46 = vadd.f32 %v3452_v42, %v1244_v21  ;;  %v3468_v42 = vld [vmem:[%s5389_s7 + $0x3] ss:$0 sm:$0xff] }
 0x2d2   : > { %v1358_v24 = vpop.f32.mrb[4].mxu0 }
 0x2d3   : > { %v1359_v27 = vadd.f32 %v3457_v23, %v1358_v24  ;;  %v3659_v28 = vpop.f32.mrb[5].mxu0  ;;  %v1428_v29 = vpop.f32.mrb[4].mxu1 }
 0x2d4   : > { %v3670_v30 = vpop.f32.mrb[5].mxu1  ;;  %v1429_v31 = vadd.f32 %v3458_v25, %v1428_v29 }
 0x2d5   : > { %3738 = vmatpush3.xpose.msk.msra.mxu0 %vm1896_vm3, %v1359_v27 }
 0x2d6   : > { %3742 = vmatprep.subr.mxu0 %v4663_v12 }
 0x2d8   : > { %3740 = vmatmul.mubr.msk.f32.vlgmr.msra.gmra.mrb[12].mxu0 %vm1896_vm3, %v1035_v32 }
 0x2d9   : > { %3743 = vmatpush3.xpose.msk.msra.mxu0 %vm1896_vm3, %v1429_v31  ;;  %3744 = vmatprep.mubr.msk.f32.mxu0 %vm4662_vm1, %v4663_v12 }
 0x2da   : > { %v1498_v37 = vpop.f32.mrb[6].mxu0  ;;  %3747 = vmatprep.subr.mxu0 %v4663_v12 }
 0x2db   : > { %v1499_v39 = vadd.f32 %v3459_v34, %v1498_v37  ;;  %v1568_v40 = vpop.f32.mrb[6].mxu1  ;;  %v3681_v41 = vpop.f32.mrb[7].mxu0  ;;  %v3467_v37 = vld [vmem:[%s5389_s7 + $0x2] ss:$0 sm:$0xff]  ;;  %s4500_s7 = sshll.u32 %s4664_s20, 4  ;;  %s4501_s7 = int_to_ptr.vmem [resolvable:$false] %s4500_s7 }
 0x2dc   : > { %v1569_v43 = vadd.f32 %v3460_v35, %v1568_v40  ;;  %3745 = vmatmul.mubr.msk.f32.vlgmr.msra.gmra.mrb[14].mxu0 %vm1896_vm3, %v1105_v36  ;;  %v3692_v44 = vpop.f32.mrb[7].mxu1  ;;  %p4503_p8 = scmp.lt.s32.totalorder %s5673_s11, %s4501_s7 }
 0x2dd   : > { %3748 = vmatpush3.xpose.msk.msra.mxu0 %vm1896_vm3, %v1499_v39  ;;  %3749 = vmatprep.mubr.msk.f32.mxu0 %vm4662_vm1, %v4663_v12 }
 0x2de   : > { %3753 = vmatpush3.xpose.msk.msra.mxu1 %vm1896_vm3, %v1569_v43  ;;  %3757 = vmatprep.subr.mxu0 %v4663_v12 }
 0x2df   : > { %3762 = vmatprep.subr.mxu1 %v4663_v12 }
 0x2e0   : > { %3750 = vmatmul.mubr.msk.f32.vlgmr.msra.gmra.mrb[16].mxu0 %vm1896_vm3, %v1175_v45 }
 0x2e1   : > { %3755 = vmatmul.mubr.msk.f32.vlgmr.msra.gmra.mrb[12].mxu1 %vm1896_vm3, %v1245_v46  ;;  %3759 = vmatprep.mubr.msk.f32.mxu0 %vm4662_vm1, %v4663_v12 }
 0x2e2   : > { %3764 = vmatprep.mubr.msk.f32.mxu1 %vm4662_vm1, %v4663_v12  ;;  %v1682_v48 = vpop.f32.mrb[8].mxu0 }
 0x2e3   : > { %v1683_v49 = vadd.f32 %v3465_v47, %v1682_v48  ;;  %v3703_v50 = vpop.f32.mrb[9].mxu0 }
 0x2e4   : > { %v1752_v52 = vpop.f32.mrb[8].mxu1  ;;  %v2541_v50 = vld [vmem:[%s5392_s14] sm:$0xff] }
 0x2e5   : > { %3758 = vmatpush3.msra.mxu0 %v1683_v49  ;;  %v1753_v53 = vadd.f32 %v3466_v51, %v1752_v52  ;;  %v3714_v54 = vpop.f32.mrb[9].mxu1  ;;  %v2542_v51 = vld [vmem:[%s5392_s14 + $0x8] sm:$0xff]  ;;  %v2543_v52 = vld [vmem:[%s5392_s14 + $0x10] sm:$0xff] }
 0x2e6   : > { %3767 = vmatprep.subr.mxu0 %v4663_v12 }
 0x2e7   : > { %3763 = vmatpush3.msra.mxu1 %v1753_v53 }
 0x2e8   : > { %3772 = vmatprep.subr.mxu1 %v4663_v12 }
 0x2ea   : > { %v5583_v55 = vpop.f32.mrb[10].mxu0 }
 0x2eb   : > { %v3725_v56 = vpop.f32.mrb[11].mxu0  ;;  %v1823_v41 = vadd.f32 %v3467_v37, %v5583_v55  ;;  %v2544_v55 = vld [vmem:[%s5392_s14 + $0x18] sm:$0xff]  ;;  %s4502_s14 = scalar_lea.vmem %s4501_s7, 256 }
 0x2ec   : > { %v5586_v57 = vpop.f32.mrb[10].mxu1  ;;  %p4504_p2 = scmp.lt.s32.totalorder %s4502_s14, %s4496_s21 }
 0x2ed   : > { %v3736_v58 = vpop.f32.mrb[11].mxu1  ;;  %v1893_v45 = vadd.f32 %v3468_v42, %v5586_v57 }
 0x2ee   : > { %p4505_p1 = por %p4504_p2, %p4503_p8 }
 0x2f0   : > { %p4506_p11 = pnand %p4505_p1, %p4499_p7 }
 0x3ab   : > { %v1969_v59 = vpop.f32.mrb[12].mxu0 }
 0x3ac   : > { %v2201_v60 = vmul.f32 0.35355338, %v1969_v59  ;;  %v3741_v61 = vpop.f32.mrb[13].mxu0 }
 0x3ae   : > { %v2205_v62 = vsel %vm1896_vm3, %v2201_v60, -inf }
 0x3af   : > { %2206 = vmax.xlane.f32.xlu0 %v2205_v62  ;;  %v2045_v63 = vpop.f32.mrb[14].mxu0 }
 0x3b0   : > { %v2202_v0 = vmul.f32 0.35355338, %v2045_v63  ;;  %v3746_v1 = vpop.f32.mrb[15].mxu0 }
 0x3b2   : > { %v2208_v2 = vsel %vm1896_vm3, %v2202_v0, -inf }
 0x3b3   : > { %2209 = vmax.xlane.f32.xlu0 %v2208_v2  ;;  %v2121_v3 = vpop.f32.mrb[16].mxu0 }
 0x3b4   : > { %v2197_v5 = vpop.f32.mrb[12].mxu1  ;;  %v2203_v6 = vmul.f32 0.35355338, %v2121_v3  ;;  %v3751_v7 = vpop.f32.mrb[17].mxu0 }
 0x3b5   : > { %v3756_v8 = vpop.f32.mrb[13].mxu1  ;;  %v2204_v9 = vmul.f32 0.35355338, %v2197_v5 }
 0x3b6   : > { %v2211_v10 = vsel %vm1896_vm3, %v2203_v6, -inf }
 0x3b7   : > { %2212 = vmax.xlane.f32.xlu1 %v2211_v10  ;;  %v2214_v11 = vsel %vm1896_vm3, %v2204_v9, -inf }
 0x3bb   : > { %2215 = vmax.xlane.f32.xlu1 %v2214_v11 }
 0x43c   : > { %v2207_v13 = vpop.xlane.xlu0 %2206 }
 0x43d   : > { %v2217_v14 = vsub.f32 %v2201_v60, %v2207_v13 }
 0x43f   : > { %v2221_v15 = vmul.f32 1.442695, %v2217_v14 }
 0x440   : > { %v2210_v16 = vpop.xlane.xlu0 %2209 }
 0x441   : > { %4086 = vpow2.f32 %v2221_v15  ;;  %v2218_v17 = vsub.f32 %v2202_v0, %v2210_v16 }
 0x443   : > { %v2223_v18 = vmul.f32 1.442695, %v2218_v17 }
 0x444   : > { %v2213_v20 = vpop.xlane.xlu1 %2212 }
 0x445   : > { %4088 = vpow2.f32 %v2223_v18  ;;  %v2219_v21 = vsub.f32 %v2203_v6, %v2213_v20 }
 0x447   : > { %v2225_v22 = vmul.f32 1.442695, %v2219_v21 }
 0x448   : > { %v2216_v23 = vpop.xlane.xlu1 %2215 }
 0x449   : > { %4090 = vpow2.f32 %v2225_v22  ;;  %v2220_v24 = vsub.f32 %v2204_v9, %v2216_v23 }
 0x44b   : > { %v4087_v25 = vpop.eup %4086  ;;  %v2227_v26 = vmul.f32 1.442695, %v2220_v24  ;;  %v2867_v24 = vld [vmem:[%s5400_s24] sm:$0xff] }
 0x44c   : > { %v2229_v27 = vsel %vm1896_vm3, %v4087_v25, 0.0 }
 0x44d   : > { %4092 = vpow2.f32 %v2227_v26  ;;  %2230 = vadd.xlane.f32.xlu0 %v2229_v27  ;;  %v2869_v26 = vld [vmem:[%s5400_s24 + $0x10] sm:$0xff]  ;;  %v2870_v27 = vld [vmem:[%s5400_s24 + $0x18] sm:$0xff] }
 0x44f   : > { %v4089_v28 = vpop.eup %4088 }
 0x450   : > { %v2232_v29 = vsel %vm1896_vm3, %v4089_v28, 0.0 }
 0x451   : > { %2233 = vadd.xlane.f32.xlu1 %v2232_v29  ;;  %v2952_v29 = vld [vmem:[%s5409_s3] sm:$0xff] }
 0x453   : > { %v4091_v30 = vpop.eup %4090 }
 0x454   : > { %v2235_v31 = vsel %vm1896_vm3, %v4091_v30, 0.0 }
 0x455   : > { %2236 = vadd.xlane.f32.xlu0 %v2235_v31  ;;  %v2954_v31 = vld [vmem:[%s5409_s3 + $0x10] sm:$0xff] }
 0x457   : > { %v4093_v32 = vpop.eup %4092 }
 0x458   : > { %v2238_v33 = vsel %vm1896_vm3, %v4093_v32, 0.0 }
 0x459   : > { %2239 = vadd.xlane.f32.xlu1 %v2238_v33  ;;  %v2955_v33 = vld [vmem:[%s5409_s3 + $0x18] sm:$0xff] }
 0x4da   : > { %v2231_v34 = vpop.xlane.xlu0 %2230 }
 0x4db   : > { %4094 = vrcp.f32 %v2231_v34  ;;  %v3909_v34 = vpack.c.bf16 %v2955_v33, %v2954_v31 }
 0x4de   : > { %v2234_v35 = vpop.xlane.xlu1 %2233 }
 0x4df   : > { %4096 = vrcp.f32 %v2234_v35  ;;  %v2956_v35 = vld [vmem:[%s5409_s3 + $0x20] sm:$0xff] }
 0x4e2   : > { %v2237_v36 = vpop.xlane.xlu0 %2236 }
 0x4e3   : > { %4098 = vrcp.f32 %v2237_v36  ;;  %v2957_v36 = vld [vmem:[%s5409_s3 + $0x28] sm:$0xff] }
 0x4e4   : > { %v3912_v37 = vpack.c.bf16 %v2957_v36, %v2956_v35 }
 0x4e5   : > { %v4095_v38 = vpop.eup %4094 }
 0x4e6   : > { %v2245_v39 = vmul.f32 %v4095_v38, %v4087_v25  ;;  %v2240_v40 = vpop.xlane.xlu1 %2239  ;;  %v2868_v25 = vld [vmem:[%s5400_s24 + $0x8] sm:$0xff] }
 0x4e7   : > { %4100 = vrcp.f32 %v2240_v40 }
 0x4e8   : > { %3760 = vmatmul.mubr.msk.f32.vlgmr.msra.gmra.mrb[18].mxu0 %vm1896_vm3, %v2245_v39 }
 0x4e9   : > { %v4097_v43 = vpop.eup %4096  ;;  %3768 = vmatpush3.msra.mxu0 %v1823_v41  ;;  %3769 = vmatprep.mubr.msk.f32.mxu0 %vm4662_vm1, %v4663_v12 }
 0x4ea   : > { %v2246_v44 = vmul.f32 %v4097_v43, %v4089_v28  ;;  %3777 = vmatprep.subr.mxu0 %v4663_v12  ;;  %v3903_v28 = vpack.c.bf16 %v2870_v27, %v2869_v26  ;;  %v2958_v43 = vld [vmem:[%s5409_s3 + $0x30] sm:$0xff] }
 0x4ec   : > { %3765 = vmatmul.mubr.msk.f32.vlgmr.msra.gmra.mrb[14].mxu1 %vm1896_vm3, %v2246_v44  ;;  %v2959_v44 = vld [vmem:[%s5409_s3 + $0x38] sm:$0xff] }
 0x4ed   : > { %v4099_v46 = vpop.eup %4098  ;;  %3773 = vmatpush3.msra.mxu1 %v1893_v45  ;;  %3774 = vmatprep.mubr.msk.f32.mxu1 %vm4662_vm1, %v4663_v12  ;;  %v3915_v45 = vpack.c.bf16 %v2959_v44, %v2958_v43 }
 0x4ee   : > { %v2247_v47 = vmul.f32 %v4099_v46, %v4091_v30  ;;  %3782 = vmatprep.subr.mxu1 %v4663_v12  ;;  %v2953_v30 = vld [vmem:[%s5409_s3 + $0x8] sm:$0xff]  ;;  %v3490_v46 = vld [vmem:[%s795_s10] ss:$0 sm:$0xff] }
 0x4f0   : > { %3770 = vmatmul.mubr.msk.f32.vlgmr.msra.gmra.mrb[20].mxu0 %vm1896_vm3, %v2247_v47 }
 0x4f1   : > { %v4101_v48 = vpop.eup %4100  ;;  %3779 = vmatprep.mubr.msk.f32.mxu0 %vm4662_vm1, %v4663_v12  ;;  %3778 = vmatpush3.msra.mxu0 %v2541_v50  ;;  %v3492_v50 = vld [vmem:[%s812_s0] ss:$0 sm:$0xff] }
 0x4f2   : > { %v2248_v49 = vmul.f32 %v4101_v48, %v4093_v32  ;;  %3787 = vmatprep.subr.mxu0 %v4663_v12  ;;  %v3906_v32 = vpack.c.bf16 %v2953_v30, %v2952_v29 }
 0x4f4   : > { %3775 = vmatmul.mubr.msk.f32.vlgmr.msra.gmra.mrb[16].mxu1 %vm1896_vm3, %v2248_v49 }
 0x4f5   : > { %3784 = vmatprep.mubr.msk.f32.mxu1 %vm4662_vm1, %v4663_v12  ;;  %3783 = vmatpush3.msra.mxu1 %v2542_v51 }
 0x4f6   : > { %3792 = vmatprep.subr.mxu1 %v4663_v12 }
 0x5bb   : > { %v2318_v53 = vpop.f32.mrb[18].mxu0 }
 0x5bc   : > { %v3761_v54 = vpop.f32.mrb[19].mxu0  ;;  %3780 = vmatmul.mubr.msk.f32.vlgmr.msra.gmra.mrb[22].mxu0 %vm1896_vm3, %v2318_v53 }
 0x5bd   : > { %3788 = vmatpush3.msra.mxu0 %v2543_v52  ;;  %3789 = vmatprep.mubr.msk.f32.mxu0 %vm4662_vm1, %v4663_v12 }
 0x5be   : > { %3899 = vmatprep.subr.bf16.mxu0 %v4661_v4 }
 0x5bf   : > { %v2391_v56 = vpop.f32.mrb[14].mxu1 }
 0x5c0   : > { %v3766_v57 = vpop.f32.mrb[15].mxu1  ;;  %3785 = vmatmul.mubr.msk.f32.vlgmr.msra.gmra.mrb[18].mxu1 %vm1896_vm3, %v2391_v56 }
 0x5c1   : > { %3793 = vmatpush3.msra.mxu1 %v2544_v55  ;;  %3794 = vmatprep.mubr.msk.f32.mxu1 %vm4662_vm1, %v4663_v12 }
 0x5c2   : > { %3905 = vmatprep.subr.bf16.mxu1 %v4661_v4 }
 0x5c3   : > { %v2464_v58 = vpop.f32.mrb[20].mxu0 }
 0x5c4   : > { %v3771_v59 = vpop.f32.mrb[21].mxu0  ;;  %3790 = vmatmul.mubr.msk.f32.vlgmr.msra.gmra.mrb[24].mxu0 %vm1896_vm3, %v2464_v58 }
 0x5c5   : > { %3805 = vmatprep.mubr.msk.f32.mxu0 %vm4662_vm1, %v4663_v12 }
 0x5c7   : > { %v2537_v60 = vpop.f32.mrb[16].mxu1 }
 0x5c8   : > { %v3776_v61 = vpop.f32.mrb[17].mxu1  ;;  %3795 = vmatmul.mubr.msk.f32.vlgmr.msra.gmra.mrb[20].mxu1 %vm1896_vm3, %v2537_v60 }
 0x5c9   : > { %3824 = vmatprep.mubr.msk.f32.mxu1 %vm4662_vm1, %v4663_v12  ;;  %v3489_v12 = vld [vmem:[%s778_s25] ss:$0 sm:$0xff]  ;;  %3907 = vmatpush3.bf16.msra.mxu1 %v3906_v32 }
 0x5ca   : > { %3908 = vmatprep.subr.bf16.mxu1 %v4661_v4 }
 0x5cd   : > { %3910 = vmatpush3.bf16.msra.mxu1 %v3909_v34 }
 0x5ce   : > { %3911 = vmatprep.subr.bf16.mxu1 %v4661_v4 }
 0x5d1   : > { %3913 = vmatpush3.bf16.msra.mxu1 %v3912_v37 }
 0x5d2   : > { %3914 = vmatprep.subr.bf16.mxu1 %v4661_v4 }
 0x5d5   : > { %3916 = vmatpush3.bf16.msra.mxu1 %v3915_v45 }
 0x68f   : > { %v2614_v62 = vpop.f32.mrb[22].mxu0 }
 0x690   : > { %v3781_v63 = vpop.f32.mrb[23].mxu0  ;;  %v2837_v1 = vsel %vm964_vm2, %v2614_v62, 0.0 }
 0x693   : > { %v2687_v0 = vpop.f32.mrb[18].mxu1 }
 0x694   : > { %v2838_v2 = vsel %vm964_vm2, %v2687_v0, 0.0  ;;  %v3786_v3 = vpop.f32.mrb[19].mxu1 }
 0x695   : > { %v2839_v5 = vadd.f32 %v2838_v2, %v2837_v1 }
 0x697   : > { %v2760_v6 = vpop.f32.mrb[24].mxu0 }
 0x698   : > { %v2840_v7 = vsel %vm964_vm2, %v2760_v6, 0.0  ;;  %v3791_v8 = vpop.f32.mrb[25].mxu0 }
 0x699   : > { %v2841_v9 = vadd.f32 %v2840_v7, %v2839_v5 }
 0x69b   : > { %v2833_v10 = vpop.f32.mrb[20].mxu1 }
 0x69c   : > { %v2842_v11 = vsel %vm964_vm2, %v2833_v10, 0.0  ;;  %v3796_v13 = vpop.f32.mrb[21].mxu1 }
 0x69d   : > { %v2843_v14 = vadd.f32 %v2842_v11, %v2841_v9 }
 0x69f   : > { %v2851_v15 = vadd.f32 %v3489_v12, %v2843_v14 }
 0x6a1   : > { %v2852_v16 = vadd.f32 %v2851_v15, %v5444_v19  ;;  %v3900_v19 = vpack.c.bf16 %v2868_v25, %v2867_v24 }
 0x6a3   : > { %v2853_v17 = vsel %vm964_vm2, %v2852_v16, 0.0  ;;  %3901 = vmatpush3.bf16.msra.mxu0 %v3900_v19 }
 0x6a4   : > { %2854 = vadd.xlane.f32.xlu0 %v2853_v17  ;;  %3902 = vmatprep.subr.bf16.mxu0 %v4661_v4 }
 0x6a7   : > { %3904 = vmatpush3.bf16.msra.mxu0 %v3903_v28 }
 0x731   : > { %v2855_v18 = vpop.xlane.xlu0 %2854 }
 0x732   : > { %v2857_v20 = vmul.f32 0.03125, %v2855_v18 }
 0x734   : > { %v2858_v21 = vsub.f32 %v2852_v16, %v2857_v20 }
 0x736   : > { %v2859_v22 = vmul.f32 %v2858_v21, %v2858_v21 }
 0x738   : > { %v2860_v23 = vsel %vm964_vm2, %v2859_v22, 0.0 }
 0x739   : > { %2861 = vadd.xlane.f32.xlu1 %v2860_v23 }
 0x7c6   : > { %v2862_v38 = vpop.xlane.xlu1 %2861 }
 0x7c7   : > { %v2863_v39 = vmul.f32 0.03125, %v2862_v38 }
 0x7c9   : > { %v2864_v40 = vadd.f32 1e-05, %v2863_v39 }
 0x7cb   : > { %4102 = vrsqrt.f32 %v2864_v40 }
 0x7d5   : > { %v4103_v41 = vpop.eup %4102 }
 0x7d6   : > { %v2866_v42 = vmul.f32 %v4103_v41, %v2858_v21 }
 0x7d8   : > { %3806 = vmatmul.mubr.msk.f32.vlgmr.msra.gmra.mrb[26].mxu0 %vm964_vm2, %v2866_v42 }
 0x8ab   : > { %v2947_v47 = vpop.f32.mrb[26].mxu0 }
 0x8ac   : > { %v2948_v48 = vadd.f32 %v3490_v46, %v2947_v47  ;;  %v3807_v49 = vpop.f32.mrb[27].mxu0 }
 0x8ae   : > { %v2951_v4 = vmax.f32 %v2948_v48, 0.0 }
 0x8b0   : > { %3825 = vmatmul.mubr.msk.f32.vlgmr.msra.gmra.mrb[22].mxu1 %vm2967_vm4, %v2951_v4 }
 0x983   : > { %v3037_v51 = vpop.f32.mrb[22].mxu1 }
 0x984   : > { %v3038_v52 = vadd.f32 %v3492_v50, %v3037_v51  ;;  %v3826_v53 = vpop.f32.mrb[23].mxu1 }
 0x986   : > { %v3041_v54 = vadd.f32 %v3038_v52, %v2866_v42 }
 0x988   : > { %v3042_v55 = vsel %vm964_vm2, %v3041_v54, 0.0 }
 0x989   : > { %3043 = vadd.xlane.f32.xlu0 %v3042_v55 }
 0xa16   : > { %v3044_v56 = vpop.xlane.xlu0 %3043 }
 0xa17   : > { %v3045_v57 = vmul.f32 0.03125, %v3044_v56 }
 0xa19   : > { %v3046_v58 = vsub.f32 %v3041_v54, %v3045_v57 }
 0xa1b   : > { %v3047_v59 = vmul.f32 %v3046_v58, %v3046_v58 }
 0xa1d   : > { %v3048_v60 = vsel %vm964_vm2, %v3047_v59, 0.0 }
 0xa1e   : > { %3049 = vadd.xlane.f32.xlu1 %v3048_v60 }
 0xaab   : > { %v3050_v61 = vpop.xlane.xlu1 %3049 }
 0xaac   : > { %v3051_v62 = vmul.f32 0.03125, %v3050_v61 }
 0xaae   : > { %v3052_v63 = vadd.f32 1e-05, %v3051_v62 }
 0xab0   : > { %4104 = vrsqrt.f32 %v3052_v63 }
 0xaba   : > { %v4105_v0 = vpop.eup %4104 }
 0xabb   : > { %v3054_v1 = vmul.f32 %v4105_v0, %v3046_v58 }
 0xabd   : > { %3055 = vst.msk [vmem:[%s5418_s17] sm:$0xff] %vm964_vm2, %v3054_v1 }
 0xabe   : > { %4509 = shalt.err (!%p4506_p11)
}
 0xabf   : > { %s4510_s23 = scalar_lea.hbm %s5671_s1, 128  ;;  %s4514_s30 = scalar_lea.hbm %s5855_s6, 256 }
 0xac0   : > { %p4511_p5 = scmp.ne.s32.totalorder %s5671_s1, %s4510_s23  ;;  %p4515_p6 = scmp.lt.u32.totalorder %s5671_s1, %s5855_s6 }
 0xac1   : > { %p4516_p12 = scmp.lt.u32.totalorder %s4514_s30, %s4510_s23  ;;  %p4518_p9 = scmp.lt.u32.totalorder %s4510_s23, %s5671_s1 }
 0xac2   : > { %p4512_p13 = pnand %p4511_p5, %p5856_p4 }
 0xac3   : > { %p4517_p3 = por %p4516_p12, %p4515_p6 }
 0xac4   : > { %p4513_p0 = pneg %p4512_p13 }
 0xac5   : > { %p4519_p10 = por %p4518_p9, %p4517_p3 }
 0xac7   : > { %p4520_p7 = pnand %p4519_p10, %p4513_p0 }
 0xac9   : > { %4523 = shalt.err (!%p4520_p7)
}
 0xaca   : > { %3943 = dma.vmem_to_hbm [thread:$0]  (%p5856_p4), %s5673_s11, 128, %s5671_s1, %s3057_s8  }
 0xacb PF: > { %p3990_p8 = scmp.ge.s32.totalorder %s4642_s18, 2  ;;  %s3082_s3 = sand.u32 1, %s4614_s28  }
 0xacc   : > { %p5857_p2 = scmp.ne.s32.totalorder %s5827_s5, 0  ;;  %s3083_s0 = scalar_lea.sflag [#allocation4], %s3082_s3 }
 0xace   : > { %p3986_p1 = pnand %p3990_p8, %p5857_p2 }
 0xad0   : > { %4597 = dma.done.wait (!%p3986_p1), %s3083_s0, 128  }
 0xad1   : > { %4599 = vsyncadd (!%p3986_p1), %s3083_s0, 4294967168  ;;  %s47_s18 = sadd.s32 1, %s4642_s18   ;;  %s5858_s15 = sld [smem:[#allocation40_spill]] }
 0xad2   : > { %p44_p11 = scmp.ge.s32.totalorder %s47_s18, 6   ;;  %s5859_s17 = sld [smem:[#allocation32_spill]] }
 0xad3   : > { %s5860_s30 = sld [smem:[#allocation41_spill]]  ;;  %s5861_s14 = sld [smem:[#allocation35_spill]] }
 0xad4   : > { %s5862_s22 = sld [smem:[#allocation36_spill]]  ;;  %s5863_s16 = sld [smem:[#allocation38_spill]] }
 0xad5   : > { %s5864_s4 = sld [smem:[#allocation39_spill]]  ;;  %s5865_s25 = smov %s4606_s26 }
 0xad6   : > { %s5866_s26 = smov %s4610_s27  ;;  %s5868_s28 = smov %s4618_s29 }
 0xad7   : > { %s5867_s27 = smov %s5858_s15  ;;  %46 = sbr.rel (!%p44_p11) target bundleno = 36 (0x24), region = 265 }
 0xad8   : > { %s5869_s29 = smov %s5859_s17 }
 0xada   : > { %s5870_s15 = smov %s5862_s22 }
 0xadb   : > { %s5871_s17 = smov %s5864_s4 }
 0xade   :  { %3088 = vsyncpa [#allocation3], 1 }
 0xadf   :  { %3090 = vsyncpa [#allocation3 + $0x1], 1 }
 0xae0   :  { %3091 = vsyncpa [#allocation6], 1 }
 0xae1   :  { %3093 = vsyncpa [#allocation6 + $0x1], 1 }
 0xae2   :  { %3094 = vsyncpa [#allocation9], 1 }
 0xae3   :  { %3096 = vsyncpa [#allocation9 + $0x1], 1 }
 0xae4   :  { %3097 = vsyncpa [#allocation12], 1 }
 0xae5   :  { %3099 = vsyncpa [#allocation12 + $0x1], 1 }
 0xae6   :  { %3100 = vsyncpa [#allocation15], 1 }
 0xae7   :  { %3102 = vsyncpa [#allocation15 + $0x1], 1 }
 0xae8   :  { %3103 = vsyncpa [#allocation18], 1 }
 0xae9   :  { %3105 = vsyncpa [#allocation18 + $0x1], 1 }
 0xaea   :  { %3106 = vsyncpa [#allocation21], 1 }
 0xaeb   :  { %3108 = vsyncpa [#allocation21 + $0x1], 1 }
 0xaec   :  { %3109 = vsyncpa [#allocation4], 1 }
 0xaed   :  { %3111 = vsyncpa [#allocation4 + $0x1], 1 }

</bundles_post_ra>
